<compile_context>
chip_gen: v5e
topology: v5e:2x2
jax: 0.10.0
libtpu: 0.0.40
codegen_flags: <defaults>
</compile_context>

<pallas_src>
import functools

import jax
import jax.numpy as jnp
from jax import lax
from jax.experimental import pallas as pl
from jax.experimental.pallas import tpu as pltpu

LN_EPS = 1e-5


# ----------------------------------------------------------------------------
# Kernel bodies
# ----------------------------------------------------------------------------
def _finalize(acc_ref, w_ref, b_ref, out_ref, apply_relu):
    # out = act(agg @ W + b). The W matmul is small (tile_m x d_in x d_out) and
    # runs once per row tile, so it stays in f32 for accuracy.
    y = jnp.dot(acc_ref[...], w_ref[...], preferred_element_type=jnp.float32)
    y = y + b_ref[...]
    if apply_relu:
        y = jnp.maximum(y, 0.0)
    out_ref[...] = y.astype(out_ref.dtype)


def gcn_layer_kernel(adj_ref, h_ref, w_ref, b_ref, out_ref, acc_ref, *,
                     apply_relu):
    """out[i] = act( (adj[i, :] @ h) @ W + b ), K-tiled over adj columns."""
    k = pl.program_id(1)

    @pl.when(k == 0)
    def _():
        acc_ref[...] = jnp.zeros_like(acc_ref)

    acc_ref[...] += jnp.dot(adj_ref[...], h_ref[...],
                            preferred_element_type=jnp.float32)

    @pl.when(k == pl.num_programs(1) - 1)
    def _():
        _finalize(acc_ref, w_ref, b_ref, out_ref, apply_relu)


def gcn_layer_ln_kernel(adj_ref, x_ref, g_ref, be_ref, w_ref, b_ref, out_ref,
                        acc_ref, *, apply_relu):
    """First layer: LayerNorm fused in front of the adjacency aggregation."""
    k = pl.program_id(1)

    @pl.when(k == 0)
    def _():
        acc_ref[...] = jnp.zeros_like(acc_ref)

    x = x_ref[...].astype(jnp.float32)
    mu = jnp.mean(x, axis=-1, keepdims=True)
    var = jnp.mean(jnp.square(x - mu), axis=-1, keepdims=True)
    h = (x - mu) * lax.rsqrt(var + LN_EPS) * g_ref[...] + be_ref[...]

    acc_ref[...] += jnp.dot(adj_ref[...], h.astype(adj_ref.dtype),
                            preferred_element_type=jnp.float32)

    @pl.when(k == pl.num_programs(1) - 1)
    def _():
        _finalize(acc_ref, w_ref, b_ref, out_ref, apply_relu)


# ----------------------------------------------------------------------------
# Per-layer pallas_call wrapper
# ----------------------------------------------------------------------------
def _gcn_layer(adj_lo, h, w, b, *, apply_relu, out_dtype, tile_m, tile_k,
               ln_scale=None, ln_bias=None):
    n = adj_lo.shape[0]
    d_in = h.shape[1]
    d_out = w.shape[1]
    grid = (n // tile_m, n // tile_k)

    in_specs = [
        pl.BlockSpec((tile_m, tile_k), lambda i, k: (i, k)),   # adj row/col tile
        pl.BlockSpec((tile_k, d_in), lambda i, k: (k, 0)),     # h (or x) k-tile
    ]
    args = [adj_lo, h]
    if ln_scale is not None:
        in_specs += [pl.BlockSpec((1, d_in), lambda i, k: (0, 0)),   # gamma
                     pl.BlockSpec((1, d_in), lambda i, k: (0, 0))]   # beta
        args += [ln_scale, ln_bias]
        kernel = functools.partial(gcn_layer_ln_kernel, apply_relu=apply_relu)
    else:
        kernel = functools.partial(gcn_layer_kernel, apply_relu=apply_relu)
    in_specs += [pl.BlockSpec((d_in, d_out), lambda i, k: (0, 0)),   # W (full)
                 pl.BlockSpec((1, d_out), lambda i, k: (0, 0))]      # b (full)
    args += [w, b]

    return pl.pallas_call(
        kernel,
        out_shape=jax.ShapeDtypeStruct((n, d_out), out_dtype),
        grid=grid,
        in_specs=in_specs,
        out_specs=pl.BlockSpec((tile_m, d_out), lambda i, k: (i, 0)),
        scratch_shapes=[pltpu.VMEM((tile_m, d_in), jnp.float32)],
        compiler_params=pltpu.CompilerParams(
            dimension_semantics=("parallel", "arbitrary"),
            vmem_limit_bytes=32 * 1024 * 1024),
    )(*args)


# ----------------------------------------------------------------------------
# gcn_lm forward
# ----------------------------------------------------------------------------
def gcn_lm_forward(x, adj, params, *, dropout=0.0, tile_m=256, tile_k=512):
    """Pallas implementation of gcn_lm.forward(x, adj, dropout=0)."""
    del dropout  # dropout=0 is the identity (see TODO above).
    n = x.shape[0]
    tile_m = min(tile_m, n)
    tile_k = min(tile_k, n)
    assert n % tile_m == 0 and n % tile_k == 0, (
        "N must be a multiple of the row / contraction tiles for this demo")

    # adj is read N^2 elements per layer -> cast once to bf16 (halves HBM traffic).
    adj_bf16 = adj.astype(jnp.bfloat16)

    ws, bs = params["w"], params["b"]
    n_layers = len(ws)

    # Layer 1: fused LayerNorm + GCN + relu, bf16 activations out.
    h = _gcn_layer(adj_bf16, x.astype(jnp.float32), ws[0], bs[0],
                   apply_relu=True, out_dtype=jnp.bfloat16,
                   tile_m=tile_m, tile_k=tile_k,
                   ln_scale=params["ln_scale"], ln_bias=params["ln_bias"])

    # Middle layers: GCN + relu.
    for l in range(1, n_layers - 1):
        h = _gcn_layer(adj_bf16, h, ws[l], bs[l],
                       apply_relu=True, out_dtype=jnp.bfloat16,
                       tile_m=tile_m, tile_k=tile_k)

    # Last layer: linear, f32 output.
    out = _gcn_layer(adj_bf16, h, ws[-1], bs[-1],
                     apply_relu=False, out_dtype=jnp.float32,
                     tile_m=tile_m, tile_k=tile_k)
    return out


# ----------------------------------------------------------------------------
# Pure-JAX reference (mirrors the kernels' bf16/f32 mixed precision)
# ----------------------------------------------------------------------------
def reference_forward(x, adj, params):
    adj_b = adj.astype(jnp.bfloat16)
    xf = x.astype(jnp.float32)
    mu = jnp.mean(xf, axis=-1, keepdims=True)
    var = jnp.mean(jnp.square(xf - mu), axis=-1, keepdims=True)
    h = (xf - mu) * lax.rsqrt(var + LN_EPS) * params["ln_scale"] + params["ln_bias"]
    h = h.astype(jnp.bfloat16)
    n_layers = len(params["w"])
    for l in range(n_layers):
        agg = jnp.dot(adj_b, h, preferred_element_type=jnp.float32)
        y = jnp.dot(agg, params["w"][l], preferred_element_type=jnp.float32,
                    precision=lax.Precision.HIGHEST) + params["b"][l]
        if l < n_layers - 1:
            h = jnp.maximum(y, 0.0).astype(jnp.bfloat16)
        else:
            h = y
    return h


def init_params(key, in_feat, out_feat):
    """Deterministic synthetic init (uniform, GCN-style 1/sqrt(fan_out) scaling)."""
    dims = [in_feat, 256, 128, 64, out_feat]   # GCN(4, [in_feat,256,128,64,out_feat])
    n_layers = len(dims) - 1
    keys = jax.random.split(key, 2 * n_layers + 2)
    ws, bs = [], []
    for l in range(n_layers):
        s = 1.0 / jnp.sqrt(jnp.float32(dims[l + 1]))
        ws.append(jax.random.uniform(keys[2 * l], (dims[l], dims[l + 1]),
                                     jnp.float32, -s, s))
        bs.append(jax.random.uniform(keys[2 * l + 1], (1, dims[l + 1]),
                                     jnp.float32, -s, s))
    # Non-trivial LayerNorm affine so the fused-LN path is fully exercised
    # (PyTorch default init is gamma=1, beta=0).
    ln_scale = 1.0 + 0.1 * jax.random.normal(keys[-2], (1, in_feat), jnp.float32)
    ln_bias = 0.1 * jax.random.normal(keys[-1], (1, in_feat), jnp.float32)
    return {"ln_scale": ln_scale, "ln_bias": ln_bias, "w": ws, "b": bs}


if __name__ == "__main__":
    key = jax.random.PRNGKey(0)
    kx, ka, kp = jax.random.split(key, 3)

    N, IN_FEAT, OUT_FEAT = 256, 128, 64   # hidden stack fixed by module: 256->128->64
    x = jax.random.normal(kx, (N, IN_FEAT), jnp.float32)

    # Symmetric, row-normalized adjacency with self-loops (typical GCN input).
    a = (jax.random.uniform(ka, (N, N)) < 0.1).astype(jnp.float32)
    a = jnp.maximum(a, a.T) + jnp.eye(N, dtype=jnp.float32)
    adj = a / jnp.sum(a, axis=1, keepdims=True)

    params = init_params(kp, IN_FEAT, OUT_FEAT)

    # Small tiles for the small demo so both grid axes (rows x K) are exercised.
    out = gcn_lm_forward(x, adj, params, tile_m=128, tile_k=128)
    jax.block_until_ready(out)

    ref = reference_forward(x, adj, params)
    assert out.shape == (N, OUT_FEAT)
    max_err = float(jnp.max(jnp.abs(out - ref)))
    assert jnp.allclose(out, ref, atol=1e-2, rtol=1e-2), f"max abs err {max_err}"

    print("KERNEL_OK")
</pallas_src>

<mosaic_0001>
module attributes {stable_mosaic.version = 11 : i64} {
  func.func @gcn_layer_ln_kernel(%arg0: i32, %arg1: i32, %arg2: memref<128x128xbf16, #tpu.memory_space<vmem>>, %arg3: memref<128x128xf32, #tpu.memory_space<vmem>>, %arg4: memref<1x128xf32, #tpu.memory_space<vmem>>, %arg5: memref<1x128xf32, #tpu.memory_space<vmem>>, %arg6: memref<128x256xf32, #tpu.memory_space<vmem>>, %arg7: memref<1x256xf32, #tpu.memory_space<vmem>>, %arg8: memref<128x256xbf16, #tpu.memory_space<vmem>>, %arg9: memref<128x128xf32, #tpu.memory_space<vmem>>) attributes {dimension_semantics = [#tpu.dimension_semantics<parallel>, #tpu.dimension_semantics<arbitrary>], iteration_bounds = array<i64: 2, 2>, scalar_prefetch = 0 : i64, scratch_operands = 1 : i64, tpu.core_type = #tpu.core_type<tc>, window_params = [{transform_indices = @transform_0, window_bounds = array<i64: 128, 128>}, {transform_indices = @transform_1, window_bounds = array<i64: 128, 128>}, {pipeline_mode = #tpu.pipeline_mode<synchronous>, transform_indices = @transform_2, window_bounds = array<i64: 1, 128>}, {pipeline_mode = #tpu.pipeline_mode<synchronous>, transform_indices = @transform_3, window_bounds = array<i64: 1, 128>}, {pipeline_mode = #tpu.pipeline_mode<synchronous>, transform_indices = @transform_4, window_bounds = array<i64: 128, 256>}, {pipeline_mode = #tpu.pipeline_mode<synchronous>, transform_indices = @transform_5, window_bounds = array<i64: 1, 256>}, {transform_indices = @transform_6, window_bounds = array<i64: 128, 256>}]} {
    %c0_i32 = arith.constant 0 : i32
    %0 = arith.cmpi eq, %arg1, %c0_i32 : i32
    %1 = arith.extui %0 : i1 to i32
    %c0_i32_0 = arith.constant 0 : i32
    %2 = arith.cmpi ne, %1, %c0_i32_0 : i32
    scf.if %2 {
      %cst_18 = arith.constant 0.000000e+00 : f32
      %37 = vector.broadcast %cst_18 : f32 to vector<128x128xf32>
      %c0_19 = arith.constant 0 : index
      %c0_20 = arith.constant 0 : index
      %38 = vector.load %arg9[%c0_19, %c0_20] : memref<128x128xf32, #tpu.memory_space<vmem>>, vector<128x128xf32>
      tpu.vector_store %arg9[%c0_19, %c0_20], %37 {strides = array<i32>} : memref<128x128xf32, #tpu.memory_space<vmem>>, vector<128x128xf32>,
    } else {
    }
    %c0 = arith.constant 0 : index
    %c0_1 = arith.constant 0 : index
    %3 = vector.load %arg3[%c0, %c0_1] : memref<128x128xf32, #tpu.memory_space<vmem>>, vector<128x128xf32>
    %cst = arith.constant dense<0.000000e+00> : vector<128xf32>
    %4 = vector.multi_reduction <add>, %3, %cst [1] : vector<128x128xf32> to vector<128xf32>
    %5 = vector.shape_cast %4 : vector<128xf32> to vector<128x1xf32>
    %cst_2 = arith.constant 1.280000e+02 : f32
    %6 = vector.broadcast %cst_2 : f32 to vector<128x1xf32>
    %7 = arith.divf %5, %6 : vector<128x1xf32>
    %8 = vector.broadcast %7 : vector<128x1xf32> to vector<128x128xf32>
    %9 = arith.subf %3, %8 : vector<128x128xf32>
    %10 = arith.mulf %9, %9 : vector<128x128xf32>
    %cst_3 = arith.constant dense<0.000000e+00> : vector<128xf32>
    %11 = vector.multi_reduction <add>, %10, %cst_3 [1] : vector<128x128xf32> to vector<128xf32>
    %12 = vector.shape_cast %11 : vector<128xf32> to vector<128x1xf32>
    %cst_4 = arith.constant 1.280000e+02 : f32
    %13 = vector.broadcast %cst_4 : f32 to vector<128x1xf32>
    %14 = arith.divf %12, %13 : vector<128x1xf32>
    %15 = vector.broadcast %7 : vector<128x1xf32> to vector<128x128xf32>
    %16 = arith.subf %3, %15 : vector<128x128xf32>
    %cst_5 = arith.constant 9.99999974E-6 : f32
    %17 = vector.broadcast %cst_5 : f32 to vector<128x1xf32>
    %18 = arith.addf %14, %17 : vector<128x1xf32>
    %19 = math.rsqrt %18 : vector<128x1xf32>
    %20 = vector.broadcast %19 : vector<128x1xf32> to vector<128x128xf32>
    %21 = arith.mulf %16, %20 : vector<128x128xf32>
    %c0_6 = arith.constant 0 : index
    %c0_7 = arith.constant 0 : index
    %22 = vector.load %arg4[%c0_6, %c0_7] : memref<1x128xf32, #tpu.memory_space<vmem>>, vector<1x128xf32>
    %23 = vector.broadcast %22 : vector<1x128xf32> to vector<128x128xf32>
    %24 = arith.mulf %21, %23 : vector<128x128xf32>
    %c0_8 = arith.constant 0 : index
    %c0_9 = arith.constant 0 : index
    %25 = vector.load %arg5[%c0_8, %c0_9] : memref<1x128xf32, #tpu.memory_space<vmem>>, vector<1x128xf32>
    %26 = vector.broadcast %25 : vector<1x128xf32> to vector<128x128xf32>
    %27 = arith.addf %24, %26 : vector<128x128xf32>
    %c0_10 = arith.constant 0 : index
    %c0_11 = arith.constant 0 : index
    %28 = vector.load %arg9[%c0_10, %c0_11] : memref<128x128xf32, #tpu.memory_space<vmem>>, vector<128x128xf32>
    %c0_12 = arith.constant 0 : index
    %c0_13 = arith.constant 0 : index
    %29 = vector.load %arg2[%c0_12, %c0_13] : memref<128x128xbf16, #tpu.memory_space<vmem>>, vector<128x128xbf16>
    %30 = arith.truncf %27 : vector<128x128xf32> to vector<128x128xbf16>
    %cst_14 = arith.constant dense<0.000000e+00> : vector<128x128xf32>
    %31 = tpu.matmul %29, %30, %cst_14 {dimension_numbers = #tpu.dot_dimension_numbers<[1], [0], [0], [1], [0, 0, 1, 1], [], []>} : vector<128x128xbf16>, vector<128x128xbf16>, vector<128x128xf32> -> vector<128x128xf32>
    %32 = arith.addf %28, %31 : vector<128x128xf32>
    %c0_15 = arith.constant 0 : index
    %c0_16 = arith.constant 0 : index
    %33 = vector.load %arg9[%c0_15, %c0_16] : memref<128x128xf32, #tpu.memory_space<vmem>>, vector<128x128xf32>
    tpu.vector_store %arg9[%c0_15, %c0_16], %32 {strides = array<i32>} : memref<128x128xf32, #tpu.memory_space<vmem>>, vector<128x128xf32>,
    %c1_i32 = arith.constant 1 : i32
    %34 = arith.cmpi eq, %arg1, %c1_i32 : i32
    %35 = arith.extui %34 : i1 to i32
    %c0_i32_17 = arith.constant 0 : i32
    %36 = arith.cmpi ne, %35, %c0_i32_17 : i32
    scf.if %36 {
      %c0_18 = arith.constant 0 : index
      %c0_19 = arith.constant 0 : index
      %37 = vector.load %arg9[%c0_18, %c0_19] : memref<128x128xf32, #tpu.memory_space<vmem>>, vector<128x128xf32>
      %c0_20 = arith.constant 0 : index
      %c0_21 = arith.constant 0 : index
      %38 = vector.load %arg6[%c0_20, %c0_21] : memref<128x256xf32, #tpu.memory_space<vmem>>, vector<128x256xf32>
      %cst_22 = arith.constant dense<0.000000e+00> : vector<128x256xf32>
      %39 = tpu.matmul %37, %38, %cst_22 {dimension_numbers = #tpu.dot_dimension_numbers<[1], [0], [0], [1], [0, 0, 1, 1], [], []>} : vector<128x128xf32>, vector<128x256xf32>, vector<128x256xf32> -> vector<128x256xf32>
      %c0_23 = arith.constant 0 : index
      %c0_24 = arith.constant 0 : index
      %40 = vector.load %arg7[%c0_23, %c0_24] : memref<1x256xf32, #tpu.memory_space<vmem>>, vector<1x256xf32>
      %41 = vector.broadcast %40 : vector<1x256xf32> to vector<128x256xf32>
      %42 = arith.addf %39, %41 : vector<128x256xf32>
      %cst_25 = arith.constant 0.000000e+00 : f32
      %43 = vector.broadcast %cst_25 : f32 to vector<128x256xf32>
      %44 = arith.maximumf %42, %43 : vector<128x256xf32>
      %45 = arith.truncf %44 : vector<128x256xf32> to vector<128x256xbf16>
      %c0_26 = arith.constant 0 : index
      %c0_27 = arith.constant 0 : index
      %46 = vector.load %arg8[%c0_26, %c0_27] : memref<128x256xbf16, #tpu.memory_space<vmem>>, vector<128x256xbf16>
      tpu.vector_store %arg8[%c0_26, %c0_27], %45 {strides = array<i32>} : memref<128x256xbf16, #tpu.memory_space<vmem>>, vector<128x256xbf16>,
    } else {
    }
    return
  }
  func.func @transform_0(%arg0: i32, %arg1: i32) -> (i32, i32) {
    %c0_i32 = arith.constant 0 : i32
    return %arg0, %arg1 : i32, i32
  }
  func.func @transform_1(%arg0: i32, %arg1: i32) -> (i32, i32) {
    %c0_i32 = arith.constant 0 : i32
    %c0_i32_0 = arith.constant 0 : i32
    return %arg1, %c0_i32 : i32, i32
  }
  func.func @transform_2(%arg0: i32, %arg1: i32) -> (i32, i32) {
    %c0_i32 = arith.constant 0 : i32
    %c0_i32_0 = arith.constant 0 : i32
    %c0_i32_1 = arith.constant 0 : i32
    return %c0_i32, %c0_i32_0 : i32, i32
  }
  func.func @transform_3(%arg0: i32, %arg1: i32) -> (i32, i32) {
    %c0_i32 = arith.constant 0 : i32
    %c0_i32_0 = arith.constant 0 : i32
    %c0_i32_1 = arith.constant 0 : i32
    return %c0_i32, %c0_i32_0 : i32, i32
  }
  func.func @transform_4(%arg0: i32, %arg1: i32) -> (i32, i32) {
    %c0_i32 = arith.constant 0 : i32
    %c0_i32_0 = arith.constant 0 : i32
    %c0_i32_1 = arith.constant 0 : i32
    return %c0_i32, %c0_i32_0 : i32, i32
  }
  func.func @transform_5(%arg0: i32, %arg1: i32) -> (i32, i32) {
    %c0_i32 = arith.constant 0 : i32
    %c0_i32_0 = arith.constant 0 : i32
    %c0_i32_1 = arith.constant 0 : i32
    return %c0_i32, %c0_i32_0 : i32, i32
  }
  func.func @transform_6(%arg0: i32, %arg1: i32) -> (i32, i32) {
    %c0_i32 = arith.constant 0 : i32
    %c0_i32_0 = arith.constant 0 : i32
    return %arg0, %c0_i32 : i32, i32
  }
}

</mosaic_0001>

<bundles_post_ra>
// kernel: tpu_custom_call.1
= control target key start
LH: loop header
LB: loop body
LE: loop exit
PB: predicated region body
PF: predicated region fallthrough
CT: control target
= control target key end

     0   :  { %s2829_s0 = inlined_call_operand.hbm [shape: bf16[256,256], index: 0, kind: input, shape index: {}]   ;;  %s2830_s1 = inlined_call_operand.hbm [shape: f32[256,128], index: 1, kind: input, shape index: {}]   ;;  %s2831_s2 = inlined_call_operand.vmem [shape: f32[1,128], index: 2, kind: input, shape index: {}]   ;;  %s2832_s3 = inlined_call_operand.hbm [shape: f32[1,128], index: 3, kind: input, shape index: {}]   ;;  %s2833_s4 = inlined_call_operand.hbm [shape: f32[128,256], index: 4, kind: input, shape index: {}]   ;;  %s2834_s5 = inlined_call_operand.vmem [shape: f32[1,256], index: 5, kind: input, shape index: {}]   ;;  %s2835_s6 = inlined_call_operand.hbm [shape: bf16[256,256], index: 6, kind: output, shape index: {}]  }
   0x1   :  { %2846 = sst [smem:[#allocation28_spill]] %s2829_s0 }
   0x2   :  { %2847 = sst [smem:[#allocation29_spill]] %s2831_s2 }
   0x3   :  { %2848 = sst [smem:[#allocation30_spill]] %s2832_s3 }
   0x4   :  { %2849 = sst [smem:[#allocation31_spill]] %s2833_s4 }
   0x5   :  { %2850 = sst [smem:[#allocation32_spill]] %s2834_s5 }
   0x6   :  { %2851 = sst [smem:[#allocation33_spill]] %s2835_s6 }
   0x7   :  { %11 = vsyncpa [#allocation4], 0 }
   0x8   :  { %13 = vsyncpa [#allocation4 + $0x1], 0 }
   0x9   :  { %14 = vsyncpa [#allocation7], 0 }
   0xa   :  { %16 = vsyncpa [#allocation7 + $0x1], 0 }
   0xb   :  { %17 = vsyncpa [#allocation10], 0 }
   0xc   :  { %18 = vsyncpa [#allocation5], 0 }
   0xd   :  { %20 = vsyncpa [#allocation5 + $0x1], 0  ;;  %s1985_s21 = smov 0   ;;  %s1987_s22 = smov 0  }
   0xe   :  { %s1989_s23 = smov 0   ;;  %s1991_s24 = smov 0  }
   0xf   :  { %s1993_s25 = smov 0   ;;  %s1995_s26 = smov 0  }
  0x10   :  { %s1997_s27 = smov 0   ;;  %s1999_s28 = smov 0  }
  0x11   :  { %s2001_s29 = smov 0   ;;  %s2003_s30 = smov 0  }
  0x12   :  { %s2005_s7 = smov 0   ;;  %s2007_s8 = smov 0  }
  0x13   :  { %s2009_s9 = smov 0   ;;  %s2011_s10 = smov 0  }
  0x14 LB: > { %2852 = sst [smem:[#allocation17_spill]] %s1884_s21  ;;  %s2052_s11 = sadd.s32 4294967295, %s1936_s10   ;;  %s1936_s10 = sphi %s2011_s10, %s26_s10   ;;  %s1932_s9 = sphi %s2009_s9, %s2909_s9   ;;  %s1928_s8 = sphi %s2007_s8, %s2919_s8   ;;  %s1924_s7 = sphi %s2005_s7, %s2907_s7   ;;  %s1920_s30 = sphi %s2003_s30, %s2918_s30   ;;  %s1916_s29 = sphi %s2001_s29, %s2917_s29   ;;  %s1912_s28 = sphi %s1999_s28, %s2916_s28   ;;  %s1908_s27 = sphi %s1997_s27, %s2915_s27   ;;  %s1904_s26 = sphi %s1995_s26, %s2914_s26   ;;  %s1900_s25 = sphi %s1993_s25, %s2913_s25   ;;  %s1896_s24 = sphi %s1991_s24, %s2912_s24   ;;  %s1892_s23 = sphi %s1989_s23, %s2904_s23   ;;  %s1888_s22 = sphi %s1987_s22, %s2911_s22   ;;  %s1884_s21 = sphi %s1985_s21, %s2910_s21  }
  0x15   : > { %2853 = sst [smem:[#allocation18_spill]] %s1892_s23  ;;  %s1334_s12 = sadd.s32 4294967294, %s1936_s10  }
  0x16   : > { %2854 = sst [smem:[#allocation19_spill]] %s1916_s29  ;;  %p60_p0 = scmp.ne.s32.totalorder %s1912_s28, %s1908_s27 }
  0x17   : > { %2855 = sst [smem:[#allocation20_spill]] %s1924_s7  ;;  %p61_p1 = scmp.eq.s32.totalorder %s2052_s11, 0 }
  0x18   : > { %2856 = sst [smem:[#allocation21_spill]] %s1932_s9  ;;  %p86_p2 = scmp.ne.s32.totalorder %s1900_s25, %s1896_s24 }
  0x19   : > { %p2061_p3 = por %p61_p1, %p60_p0  ;;  %p193_p4 = scmp.ne.s32.totalorder %s1892_s23, %s1888_s22 }
  0x1a   : > { %p2069_p5 = por %p86_p2, %p61_p1  ;;  %p194_p6 = scmp.eq.s32.totalorder %s2052_s11, 3 }
  0x1b   : > { %p199_p7 = scmp.ne.s32.totalorder %s1888_s22, %s1884_s21  ;;  %p200_p8 = scmp.eq.s32.totalorder %s1334_s12, 3 }
  0x1c   : > { %p2076_p9 = por %p194_p6, %p193_p4  ;;  %p1335_p10 = scmp.ge.s32.totalorder %s1936_s10, 1 }
  0x1d   : > { %p2081_p11 = por %p200_p8, %p199_p7  ;;  %p207_p12 = scmp.lt.s32.totalorder %s1936_s10, 5 }
  0x1e   : > { %s2859_s16 = scalar_select %p2076_p9, 1, 0 }
  0x1f   : > { %s2861_s17 = scalar_select %p2081_p11, 1, 0 }
  0x20   : > { %2860 = sst [smem:[#allocation22_spill]] %s2859_s16  ;;  %p2089_p13 = pnand %p1335_p10, %p207_p12 }
  0x21   : > { %2862 = sst [smem:[#allocation23_spill]] %s2861_s17  ;;  %s1938_s27 = smov [#allocation8]  }
  0x22   : > { %s2863_s3 = sld [smem:[#allocation30_spill]]  ;;  %p1474_p0 = pneg %p2089_p13 }
  0x23   : > { %s224_s12 = sshll.u32 %s1938_s27, 4  ;;  %s2865_s4 = sld [smem:[#allocation31_spill]]  ;;  %s225_s12 = int_to_ptr.vmem [resolvable:$true] %s224_s12 }
  0x24   : > { %p1475_p2 = pnand %p1474_p0, %p61_p1  ;;  %s1939_s19 = smov [#allocation9]  }
  0x25   : > { %s1940_s27 = smov 256   ;;  %s1941_s21 = smov 16  }
  0x26   : > { %s35_s6 = sadd.s32 1, %s1928_s8  ;;  %s38_s13 = sadd.s32 1, %s1932_s9 }
  0x27   : > { %p36_p4 = scmp.ge.s32.totalorder %s35_s6, 2  ;;  %s47_s17 = sadd.s32 1, %s1916_s29 }
  0x28   : > { %s222_s20 = sshll.u32 %s2863_s3, 4  ;;  %s235_s3 = sshll.u32 %s1939_s19, 4  ;;  %s223_s20 = int_to_ptr.hbm [resolvable:$true] %s222_s20  ;;  %s236_s3 = int_to_ptr.vmem [resolvable:$true] %s235_s3 }
  0x29   : > { %s233_s18 = sshll.u32 %s2865_s4, 4  ;;  %p54_p6 = scmp.ne.s32.totalorder %s1916_s29, %s1912_s28  ;;  %s234_s18 = int_to_ptr.hbm [resolvable:$true] %s233_s18 }
  0x2a   : > { %1477 = dma.hbm_to_vmem [thread:$0]  (!%p1475_p2), %s223_s20, 16, %s225_s12, [#allocation7]  }
  0x2b   : > { %1480 = dma.hbm_to_vmem [thread:$0]  (!%p1475_p2), %s234_s18, 4096, %s236_s3, [#allocation10], %s1940_s27, %s1940_s27, %s1941_s21  }
  0x2c   : > { %p55_p7 = scmp.eq.s32.totalorder %s1936_s10, 0  ;;  %s2921_s6 = smov (%p36_p4, %s35_s6), 0 }
  0x2d   : > { %2866 = sst [smem:[#allocation24_spill]] %s2921_s6  ;;  %s2923_s13 = smov (!%p36_p4, %s38_s13), %s1932_s9 }
  0x2e   : > { %s2111_s20 = ssub.s32 %s1928_s8, %s2921_s6  ;;  %p2115_p8 = por %p55_p7, %p54_p6 }
  0x2f   : > { %p40_p10 = scmp.ge.s32.totalorder %s2923_s13, 2  ;;  %p71_p12 = scmp.eq.s32.totalorder %s2111_s20, 0 }
  0x30   : > { %p1494_p0 = scmp.lt.s32.totalorder %s1936_s10, 4  ;;  %s252_s21 = sand.u32 1, %s1916_s29  }
  0x31   : > { %s2925_s13 = smov (%p40_p10, %s2923_s13), 0  ;;  %s1339_s12 = sshll.u32 %s252_s21, 6 }
  0x32   : > { %2868 = sst [smem:[#allocation25_spill]] %s2925_s13  ;;  %s42_s18 = ssub.s32 %s1932_s9, %s2925_s13 }
  0x33   : > { %s44_s19 = sor.u32 %s2111_s20, %s42_s18  ;;  %p181_p2 = scmp.eq.s32.totalorder %s42_s18, 0 }
  0x34   : > { %p45_p4 = scmp.eq.s32.totalorder %s44_s19, 0  ;;  %s1392_s27 = sshll.u32 %s1932_s9, 5 }
  0x35   : > { %s2869_s4 = sadd.s32 1, %s1892_s23  ;;  %s261_s7 = sadd.s32 %s1928_s8, %s1392_s27 }
  0x36   : > { %s2131_s6 = scalar_select %p181_p2, %s1892_s23, %s2869_s4  }
  0x37   : > { %s2134_s16 = scalar_select %p45_p4, %s1916_s29, %s47_s17  }
  0x38   : > { %2870 = sst [smem:[#allocation26_spill]] %s2131_s6  ;;  %s256_s5 = scalar_lea.vmem [#allocation3], %s1339_s12 }
  0x39   : > { %2871 = sst [smem:[#allocation27_spill]] %s2134_s16  ;;  %s266_s2 = sshll.u32 %s256_s5, 4  ;;  %s267_s2 = int_to_ptr.vmem [resolvable:$true] %s266_s2 }
  0x3a   : > { %s1342_s13 = sshll.u32 %s261_s7, 2  ;;  %s2872_s0 = sld [smem:[#allocation28_spill]] }
  0x3b   : > { %p1482_p6 = pnand %p1494_p0, %p2115_p8  ;;  %s253_s27 = scalar_lea.sflag [#allocation4], %s252_s21 }
  0x3c   : > { %s1942_s9 = smov 128   ;;  %s1943_s12 = smov 64  }
  0x3d   : > { %s1944_s16 = smov 4   ;;  %s276_s5 = sand.u32 1, %s1936_s10  }
  0x3e   : > { %s73_s7 = sadd.s32 1, %s1904_s26  ;;  %p80_p10 = scmp.ne.s32.totalorder %s1904_s26, %s1900_s25 }
  0x3f   : > { %s2151_s29 = scalar_select %p71_p12, %s1904_s26, %s73_s7  }
  0x40   : > { %s263_s4 = scalar_lea.hbm %s2872_s0, %s1342_s13  ;;  %p82_p2 = por %p80_p10, %p55_p7 }
  0x41   : > { %s264_s17 = sshll.u32 %s263_s4, 4  ;;  %s278_s13 = sand.u32 1, %s1904_s26   ;;  %s265_s17 = int_to_ptr.hbm [resolvable:$true] %s264_s17 }
  0x42   : > { %1484 = dma.hbm_to_vmem [thread:$0]  (!%p1482_p6), %s265_s17, 1024, %s267_s2, %s253_s27, %s1942_s9, %s1943_s12, %s1944_s16  }
  0x43   : > { %s1343_s3 = sshll.u32 %s278_s13, 7  ;;  %s1393_s18 = sshll.u32 %s1928_s8, 7 }
  0x44   : > { %s285_s21 = scalar_lea.hbm %s2830_s1, %s1393_s18  ;;  %s280_s6 = scalar_lea.vmem [#allocation6], %s1343_s3 }
  0x45   : > { %s286_s0 = sshll.u32 %s285_s21, 4  ;;  %s288_s23 = sshll.u32 %s280_s6, 4  ;;  %s287_s0 = int_to_ptr.hbm [resolvable:$true] %s286_s0  ;;  %s289_s23 = int_to_ptr.vmem [resolvable:$true] %s288_s23 }
  0x46   : > { %p1485_p8 = pnand %p1494_p0, %p82_p2  ;;  %s277_s2 = scalar_lea.sflag [#allocation7], %s276_s5 }
  0x47   : > { %s1945_s16 = smov 8   ;;  %300 = sbr.rel (%p2089_p13) target bundleno = 841 (0x349), region = 44 }
  0x48   : > { %1487 = dma.hbm_to_vmem [thread:$0]  (!%p1485_p8), %s287_s0, 2048, %s289_s23, %s277_s2, %s1942_s9, %s1942_s9, %s1945_s16  }
  0x49   : > { %s302_s20 = sand.u32 (!%p2089_p13), 1, %s1912_s28  }
  0x4a   : > { %s1347_s17 = sshll.u32 (!%p2089_p13), %s302_s20, 6  ;;  %s303_s27 = scalar_lea.sflag (!%p2089_p13), [#allocation4], %s302_s20 }
  0x4b   : > { %s2165_s12 = scalar_lea.vmem (!%p2089_p13), [#allocation3], %s1347_s17 }
  0x4c   : > { %1863 = dma.done.wait (%p2061_p3), %s303_s27, 1024  }
  0x4d   : > { %1865 = vsyncadd (%p2061_p3), %s303_s27, 4294966272  ;;  %s312_s6 = sand.u32 1, %s2052_s11   ;;  %s314_s0 = sand.u32 1, %s1900_s25  }
  0x4e   : > { %s1348_s23 = sshll.u32 %s314_s0, 7  ;;  %s313_s9 = scalar_lea.sflag [#allocation7], %s312_s6 }
  0x4f   : > { %s2173_s24 = scalar_lea.vmem [#allocation6], %s1348_s23 }
  0x50   : > { %1867 = dma.done.wait (%p2069_p5), %s313_s9, 2048  }
  0x51   : > { %1869 = vsyncadd (%p2069_p5), %s313_s9, 4294965248 }
  0x52   : > { %1871 = dma.done.wait (%p61_p1), [#allocation7], 16  }
  0x53   : > { %1873 = vsyncadd (%p61_p1), [#allocation7], 4294967280 }
  0x54   : > { %1875 = dma.done.wait (%p61_p1), [#allocation10], 4096  }
  0x55   : > { %1877 = vsyncadd (%p61_p1), [#allocation10], 4294963200  ;;  %s358_s14 = sand.u32 1, %s1888_s22   ;;  %p1352_p3 = scmp.ne.s32.totalorder %s1920_s30, 0 }
  0x56   : > { %s1351_s5 = sshll.u32 %s358_s14, 7 }
  0x57   : > { %s2190_s7 = scalar_lea.vmem [#allocation11], %s1351_s5  ;;  %367 = sbr.rel (%p1352_p3) target bundleno = 109 (0x6d), region = 64 }
  0x5c   : > { %v1946_v0 = vmov 0.0  }
  0x5d   : > { %368 = vst [vmem:[#allocation2 + $0x30] sm:$0xff] %v1946_v0 }
  0x5e   : > { %369 = vst [vmem:[#allocation2] sm:$0xff] %v1946_v0 }
  0x5f   : > { %370 = vst [vmem:[#allocation2 + $0x58] sm:$0xff] %v1946_v0 }
  0x60   : > { %371 = vst [vmem:[#allocation2 + $0x18] sm:$0xff] %v1946_v0 }
  0x61   : > { %372 = vst [vmem:[#allocation2 + $0x50] sm:$0xff] %v1946_v0 }
  0x62   : > { %373 = vst [vmem:[#allocation2 + $0x68] sm:$0xff] %v1946_v0 }
  0x63   : > { %374 = vst [vmem:[#allocation2 + $0x8] sm:$0xff] %v1946_v0 }
  0x64   : > { %375 = vst [vmem:[#allocation2 + $0x48] sm:$0xff] %v1946_v0 }
  0x65   : > { %376 = vst [vmem:[#allocation2 + $0x40] sm:$0xff] %v1946_v0 }
  0x66   : > { %377 = vst [vmem:[#allocation2 + $0x20] sm:$0xff] %v1946_v0 }
  0x67   : > { %378 = vst [vmem:[#allocation2 + $0x10] sm:$0xff] %v1946_v0 }
  0x68   : > { %379 = vst [vmem:[#allocation2 + $0x38] sm:$0xff] %v1946_v0 }
  0x69   : > { %380 = vst [vmem:[#allocation2 + $0x60] sm:$0xff] %v1946_v0 }
  0x6a   : > { %381 = vst [vmem:[#allocation2 + $0x70] sm:$0xff] %v1946_v0 }
  0x6b   : > { %382 = vst [vmem:[#allocation2 + $0x78] sm:$0xff] %v1946_v0 }
  0x6c   : > { %383 = vst [vmem:[#allocation2 + $0x28] sm:$0xff] %v1946_v0 }
  0x6d PF: > { %v398_v1 = vld [vmem:[%s2173_s24 + $0x70] sm:$0xff]  ;;  %v396_v2 = vld [vmem:[%s2173_s24 + $0x60] sm:$0xff]  ;;  %v399_v4 = vld [vmem:[%s2173_s24 + $0x78] sm:$0xff]  ;;  %v1947_v17 = vmov 128.0   ;;  %s2877_s13 = sld [smem:[#allocation29_spill]]  ;;  %p1385_p1 = scmp.ne.s32.totalorder %s1920_s30, 1 }
  0x6e   : > { %v2196_v3 = vld [vmem:[%s2173_s24 + $0x50] sm:$0xff]  ;;  %428 = vadd.xlane.f32.xlu0 %v398_v1  ;;  %424 = vadd.xlane.f32.xlu1 %v396_v2  ;;  %v397_v5 = vld [vmem:[%s2173_s24 + $0x68] sm:$0xff]  ;;  %v395_v6 = vld [vmem:[%s2173_s24 + $0x58] sm:$0xff]  ;;  %1624 = vrcp.f32 %v1947_v17  ;;  %s2896_s18 = sld [smem:[#allocation32_spill]] (!%p1385_p1) }
  0x6f   : > { %420 = vadd.xlane.f32.xlu2 %v2196_v3  ;;  %v392_v7 = vld [vmem:[%s2173_s24 + $0x40] sm:$0xff]  ;;  %v2204_v8 = vld [vmem:[%s2173_s24 + $0x48] sm:$0xff]  ;;  %v390_v9 = vld [vmem:[%s2173_s24 + $0x30] sm:$0xff] }
  0x70   : > { %v2209_v10 = vld [vmem:[%s2173_s24 + $0x38] sm:$0xff]  ;;  %v2212_v11 = vld [vmem:[%s2173_s24 + $0x20] sm:$0xff]  ;;  %v2215_v12 = vld [vmem:[%s2173_s24 + $0x28] sm:$0xff] }
  0x71   : > { %v2221_v13 = vld [vmem:[%s2173_s24 + $0x10] sm:$0xff]  ;;  %v2224_v14 = vld [vmem:[%s2173_s24 + $0x18] sm:$0xff]  ;;  %v2227_v15 = vld [vmem:[%s2173_s24] sm:$0xff] }
  0x72   : > { %v2233_v16 = vld [vmem:[%s2173_s24 + $0x8] sm:$0xff] }
  0x74   : > { %v1625_v18 = vpop.eup %1624 }
  0x75   : > { %v433_v19 = vmul.f32 128.0, %v1625_v18  ;;  %vm437_vm0 = vweird.f32 %v1625_v18 }
  0x76   : > { %430 = vadd.xlane.f32.xlu0 %v399_v4  ;;  %426 = vadd.xlane.f32.xlu1 %v397_v5 }
  0x77   : > { %422 = vadd.xlane.f32.xlu2 %v395_v6  ;;  %v434_v20 = vsub.f32 1.0, %v433_v19 }
  0x79   : > { %v435_v21 = vmul.f32 %v1625_v18, %v434_v20 }
  0x7b   : > { %v436_v22 = vadd.f32 %v1625_v18, %v435_v21 }
  0x7d   : > { %v2236_v23 = vsel %vm437_vm0, %v1625_v18, %v436_v22 }
  0x7e   : > { %416 = vadd.xlane.f32.xlu0 %v392_v7  ;;  %418 = vadd.xlane.f32.xlu1 %v2204_v8 }
  0x7f   : > { %412 = vadd.xlane.f32.xlu2 %v390_v9 }
  0x86   : > { %414 = vadd.xlane.f32.xlu0 %v2209_v10  ;;  %408 = vadd.xlane.f32.xlu1 %v2212_v11 }
  0x87   : > { %410 = vadd.xlane.f32.xlu2 %v2215_v12 }
  0x8e   : > { %404 = vadd.xlane.f32.xlu0 %v2221_v13  ;;  %406 = vadd.xlane.f32.xlu1 %v2224_v14 }
  0x8f   : > { %400 = vadd.xlane.f32.xlu2 %v2227_v15 }
  0x96   : > { %402 = vadd.xlane.f32.xlu0 %v2233_v16 }
  0xe1   : > { %v429_v24 = vpop.xlane.xlu0 %428  ;;  %v425_v25 = vpop.xlane.xlu1 %424 }
  0xe2   : > { %v453_v26 = vmul.f32 %v2236_v23, %v429_v24  ;;  %v451_v27 = vmul.f32 %v2236_v23, %v425_v25  ;;  %v421_v28 = vpop.xlane.xlu2 %420 }
  0xe3   : > { %v449_v42 = vmul.f32 %v2236_v23, %v421_v28 }
  0xe4   : > { %v2240_v29 = vsub.f32 %v398_v1, %v453_v26  ;;  %v2242_v30 = vsub.f32 %v396_v2, %v451_v27 }
  0xe5   : > { %v2265_v48 = vsub.f32 %v2196_v3, %v449_v42 }
  0xe6   : > { %v485_v31 = vmul.f32 %v2240_v29, %v2240_v29  ;;  %v483_v32 = vmul.f32 %v2242_v30, %v2242_v30 }
  0xe7   : > { %v481_v56 = vmul.f32 %v2265_v48, %v2265_v48 }
  0xe8   : > { %515 = vadd.xlane.f32.xlu1 %v485_v31  ;;  %511 = vadd.xlane.f32.xlu0 %v483_v32 }
  0xe9   : > { %v431_v33 = vpop.xlane.xlu0 %430  ;;  %v427_v34 = vpop.xlane.xlu1 %426 }
  0xea   : > { %v454_v35 = vmul.f32 %v2236_v23, %v431_v33  ;;  %v452_v36 = vmul.f32 %v2236_v23, %v427_v34  ;;  %v423_v37 = vpop.xlane.xlu2 %422 }
  0xeb   : > { %v450_v38 = vmul.f32 %v2236_v23, %v423_v37 }
  0xec   : > { %v2251_v39 = vsub.f32 %v399_v4, %v454_v35  ;;  %v2253_v40 = vsub.f32 %v397_v5, %v452_v36 }
  0xed   : > { %v2255_v41 = vsub.f32 %v395_v6, %v450_v38 }
  0xee   : > { %v484_v43 = vmul.f32 %v2253_v40, %v2253_v40  ;;  %v486_v44 = vmul.f32 %v2251_v39, %v2251_v39 }
  0xef   : > { %v482_v45 = vmul.f32 %v2255_v41, %v2255_v41 }
  0xf0   : > { %513 = vadd.xlane.f32.xlu1 %v484_v43  ;;  %517 = vadd.xlane.f32.xlu2 %v486_v44 }
  0xf1   : > { %509 = vadd.xlane.f32.xlu0 %v482_v45  ;;  %v417_v46 = vpop.xlane.xlu0 %416  ;;  %v419_v47 = vpop.xlane.xlu1 %418 }
  0xf2   : > { %v447_v49 = vmul.f32 %v2236_v23, %v417_v46  ;;  %v413_v50 = vpop.xlane.xlu2 %412  ;;  %v448_v53 = vmul.f32 %v2236_v23, %v419_v47 }
  0xf3   : > { %v445_v51 = vmul.f32 %v2236_v23, %v413_v50 }
  0xf4   : > { %v2269_v52 = vsub.f32 %v392_v7, %v447_v49  ;;  %v2281_v58 = vsub.f32 %v2204_v8, %v448_v53 }
  0xf5   : > { %v2272_v54 = vsub.f32 %v390_v9, %v445_v51 }
  0xf6   : > { %v479_v55 = vmul.f32 %v2269_v52, %v2269_v52  ;;  %v480_v1 = vmul.f32 %v2281_v58, %v2281_v58 }
  0xf7   : > { %v477_v57 = vmul.f32 %v2272_v54, %v2272_v54 }
  0xf8   : > { %503 = vadd.xlane.f32.xlu1 %v479_v55  ;;  %507 = vadd.xlane.f32.xlu2 %v481_v56 }
  0xf9   : > { %499 = vadd.xlane.f32.xlu0 %v477_v57  ;;  %v415_v59 = vpop.xlane.xlu0 %414  ;;  %v409_v60 = vpop.xlane.xlu1 %408 }
  0xfa   : > { %v446_v61 = vmul.f32 %v2236_v23, %v415_v59  ;;  %v411_v62 = vpop.xlane.xlu2 %410  ;;  %v443_v2 = vmul.f32 %v2236_v23, %v409_v60 }
  0xfb   : > { %v444_v63 = vmul.f32 %v2236_v23, %v411_v62 }
  0xfc   : > { %v2286_v0 = vsub.f32 %v2209_v10, %v446_v61  ;;  %v2299_v6 = vsub.f32 %v2212_v11, %v443_v2 }
  0xfd   : > { %v2292_v3 = vsub.f32 %v2215_v12, %v444_v63 }
  0xfe   : > { %v478_v4 = vmul.f32 %v2286_v0, %v2286_v0  ;;  %v475_v18 = vmul.f32 %v2299_v6, %v2299_v6 }
  0xff   : > { %v476_v5 = vmul.f32 %v2292_v3, %v2292_v3 }
 0x100   : > { %501 = vadd.xlane.f32.xlu1 %v478_v4  ;;  %505 = vadd.xlane.f32.xlu2 %v480_v1 }
 0x101   : > { %497 = vadd.xlane.f32.xlu0 %v476_v5  ;;  %v405_v7 = vpop.xlane.xlu0 %404  ;;  %v407_v8 = vpop.xlane.xlu1 %406 }
 0x102   : > { %v441_v9 = vmul.f32 %v2236_v23, %v405_v7  ;;  %v401_v10 = vpop.xlane.xlu2 %400  ;;  %v442_v19 = vmul.f32 %v2236_v23, %v407_v8 }
 0x103   : > { %v439_v12 = vmul.f32 %v2236_v23, %v401_v10 }
 0x104   : > { %v2304_v17 = vsub.f32 %v2221_v13, %v441_v9  ;;  %v2317_v22 = vsub.f32 %v2224_v14, %v442_v19 }
 0x105   : > { %v2310_v20 = vsub.f32 %v2227_v15, %v439_v12 }
 0x106   : > { %v473_v11 = vmul.f32 %v2304_v17, %v2304_v17  ;;  %v474_v15 = vmul.f32 %v2317_v22, %v2317_v22 }
 0x107   : > { %v471_v21 = vmul.f32 %v2310_v20, %v2310_v20 }
 0x108   : > { %491 = vadd.xlane.f32.xlu1 %v473_v11  ;;  %495 = vadd.xlane.f32.xlu2 %v475_v18 }
 0x109   : > { %487 = vadd.xlane.f32.xlu0 %v471_v21  ;;  %v403_v13 = vpop.xlane.xlu0 %402 }
 0x10a   : > { %v440_v24 = vmul.f32 %v2236_v23, %v403_v13 }
 0x10c   : > { %v2321_v25 = vsub.f32 %v2233_v16, %v440_v24 }
 0x10e   : > { %v472_v26 = vmul.f32 %v2321_v25, %v2321_v25 }
 0x110   : > { %489 = vadd.xlane.f32.xlu1 %v472_v26  ;;  %493 = vadd.xlane.f32.xlu2 %v474_v15 }
 0x15b   : > { %v516_v27 = vpop.xlane.xlu1 %515  ;;  %v512_v28 = vpop.xlane.xlu0 %511 }
 0x15c   : > { %v533_v14 = vmul.f32 %v516_v27, %v2236_v23  ;;  %v531_v31 = vmul.f32 %v512_v28, %v2236_v23 }
 0x15e   : > { %v549_v32 = vadd.f32 1e-05, %v533_v14  ;;  %v2329_v33 = vadd.f32 1e-05, %v531_v31 }
 0x160   : > { %1626 = vrsqrt.f32 %v549_v32  ;;  %vm697_vm2 = vweird.f32 %v549_v32  ;;  %vm677_vm4 = vweird.f32 %v2329_v33 }
 0x161   : > { %1628 = vrsqrt.f32 %v2329_v33 }
 0x163   : > { %v514_v16 = vpop.xlane.xlu1 %513  ;;  %v518_v34 = vpop.xlane.xlu2 %517 }
 0x164   : > { %v532_v35 = vmul.f32 %v514_v16, %v2236_v23  ;;  %v510_v36 = vpop.xlane.xlu0 %509  ;;  %v534_v37 = vmul.f32 %v518_v34, %v2236_v23 }
 0x165   : > { %v530_v38 = vmul.f32 %v510_v36, %v2236_v23 }
 0x166   : > { %v2335_v42 = vpop.eup %1626  ;;  %v2337_v43 = vadd.f32 1e-05, %v532_v35  ;;  %v2339_v44 = vadd.f32 1e-05, %v534_v37 }
 0x167   : > { %v2341_v45 = vpop.eup %1628  ;;  %v692_v46 = vmul.f32 %v2335_v42, %v549_v32  ;;  %v2344_v47 = vadd.f32 1e-05, %v530_v38  ;;  %vm698_vm1 = vweird.f32 %v2335_v42 }
 0x168   : > { %v672_v49 = vmul.f32 %v2341_v45, %v2329_v33  ;;  %1630 = vrsqrt.f32 %v2337_v43  ;;  %vm2376_vm3 = vmor %vm697_vm2, %vm698_vm1  ;;  %vm678_vm5 = vweird.f32 %v2341_v45  ;;  %vm687_vm6 = vweird.f32 %v2337_v43 }
 0x169   : > { %v693_v50 = vmul.f32 %v2335_v42, %v692_v46  ;;  %1632 = vrsqrt.f32 %v2344_v47  ;;  %vm667_vm7 = vweird.f32 %v2344_v47  ;;  %vm2397_vm8 = vmor %vm677_vm4, %vm678_vm5  ;;  %vm707_vm9 = vweird.f32 %v2339_v44 }
 0x16a   : > { %v673_v51 = vmul.f32 %v2341_v45, %v672_v49  ;;  %1634 = vrsqrt.f32 %v2339_v44 }
 0x16b   : > { %v694_v53 = vmul.f32 0.5, %v693_v50  ;;  %v504_v55 = vpop.xlane.xlu1 %503  ;;  %v508_v56 = vpop.xlane.xlu2 %507 }
 0x16c   : > { %v674_v57 = vmul.f32 0.5, %v673_v51  ;;  %v527_v59 = vmul.f32 %v504_v55, %v2236_v23  ;;  %v500_v60 = vpop.xlane.xlu0 %499  ;;  %v529_v61 = vmul.f32 %v508_v56, %v2236_v23 }
 0x16d   : > { %v695_v62 = vsub.f32 1.5, %v694_v53  ;;  %v525_v63 = vmul.f32 %v500_v60, %v2236_v23  ;;  %v2414_v53 = vld [vmem:[%s2877_s13] ss:$0 sm:$0xff] }
 0x16e   : > { %v2356_v1 = vpop.eup %1630  ;;  %v2358_v2 = vadd.f32 1e-05, %v527_v59  ;;  %v675_v5 = vsub.f32 1.5, %v674_v57  ;;  %v2371_v18 = vadd.f32 1e-05, %v529_v61 }
 0x16f   : > { %v2360_v4 = vpop.eup %1632  ;;  %v682_v7 = vmul.f32 %v2356_v1, %v2337_v43  ;;  %v2365_v8 = vadd.f32 1e-05, %v525_v63  ;;  %v696_v10 = vmul.f32 %v2335_v42, %v695_v62  ;;  %vm688_vm11 = vweird.f32 %v2356_v1 }
 0x170   : > { %v1635_v9 = vpop.eup %1634  ;;  %v662_v12 = vmul.f32 %v2360_v4, %v2344_v47  ;;  %1636 = vrsqrt.f32 %v2358_v2  ;;  %v676_v14 = vmul.f32 %v2341_v45, %v675_v5  ;;  %vm668_vm12 = vweird.f32 %v2360_v4  ;;  %vm2443_vm14 = vmor %vm687_vm6, %vm688_vm11 }
 0x171   : > { %v683_v19 = vmul.f32 %v2356_v1, %v682_v7  ;;  %v702_v11 = vmul.f32 %v1635_v9, %v2339_v44  ;;  %1638 = vrsqrt.f32 %v2365_v8  ;;  %v700_v28 = vsel %vm2376_vm3, %v2335_v42, %v696_v10  ;;  %vm2464_vm1 = vmor %vm667_vm7, %vm668_vm12 }
 0x172   : > { %v663_v21 = vmul.f32 %v2360_v4, %v662_v12  ;;  %1640 = vrsqrt.f32 %v2371_v18  ;;  %vm708_vm10 = vweird.f32 %v1635_v9  ;;  %v725_v50 = vmul.f32 %v700_v28, %v2240_v29 }
 0x173   : > { %v684_v24 = vmul.f32 0.5, %v683_v19  ;;  %v703_v15 = vmul.f32 %v1635_v9, %v702_v11  ;;  %v502_v26 = vpop.xlane.xlu1 %501  ;;  %v506_v27 = vpop.xlane.xlu2 %505  ;;  %v680_v51 = vsel %vm2397_vm8, %v2341_v45, %v676_v14  ;;  %vm709_vm13 = vmor %vm707_vm9, %vm708_vm10  ;;  %vm637_vm15 = vweird.f32 %v2358_v2 }
 0x174   : > { %v498_v31 = vpop.xlane.xlu0 %497  ;;  %v664_v32 = vmul.f32 0.5, %v663_v21  ;;  %v526_v34 = vmul.f32 %v502_v26, %v2236_v23  ;;  %v528_v38 = vmul.f32 %v506_v27, %v2236_v23  ;;  %v723_v63 = vmul.f32 %v680_v51, %v2242_v30 }
 0x175   : > { %v704_v16 = vmul.f32 0.5, %v703_v15  ;;  %v524_v35 = vmul.f32 %v498_v31, %v2236_v23  ;;  %v685_v37 = vsub.f32 1.5, %v684_v24  ;;  %v745_v13 = vmul.f32 %v2414_v53, %v725_v50  ;;  %v2450_v15 = vld [vmem:[#allocation8] ss:$0 sm:$0xff] }
 0x176   : > { %v2390_v36 = vpop.eup %1636  ;;  %v2409_v33 = vadd.f32 1e-05, %v526_v34  ;;  %v665_v56 = vsub.f32 1.5, %v664_v32  ;;  %v2430_v62 = vadd.f32 1e-05, %v528_v38  ;;  %vm617_vm0 = vweird.f32 %v2365_v8 }
 0x177   : > { %v705_v46 = vsub.f32 1.5, %v704_v16  ;;  %v632_v49 = vmul.f32 %v2390_v36, %v2358_v2  ;;  %v2416_v55 = vpop.eup %1638  ;;  %v2419_v29 = vadd.f32 1e-05, %v524_v35  ;;  %v686_v45 = vmul.f32 %v2356_v1, %v685_v37 }
 0x178   : > { %v2421_v60 = vpop.eup %1640  ;;  %v612_v61 = vmul.f32 %v2416_v55, %v2365_v8  ;;  %1642 = vrsqrt.f32 %v2409_v33  ;;  %vm638_vm2 = vweird.f32 %v2390_v36  ;;  %vm657_vm3 = vweird.f32 %v2371_v18 }
 0x179   : > { %v706_v57 = vmul.f32 %v1635_v9, %v705_v46  ;;  %v633_v59 = vmul.f32 %v2390_v36, %v632_v49  ;;  %v652_v10 = vmul.f32 %v2421_v60, %v2371_v18  ;;  %1644 = vrsqrt.f32 %v2419_v29  ;;  %vm2504_vm5 = vmor %vm637_vm15, %vm638_vm2 }
 0x17a   : > { %v613_v11 = vmul.f32 %v2416_v55, %v612_v61  ;;  %v690_v26 = vsel %vm2443_vm14, %v2356_v1, %v686_v45  ;;  %1646 = vrsqrt.f32 %v2430_v62  ;;  %v2473_v16 = vmul.f32 %v2414_v53, %v723_v63 }
 0x17b   : > { %v710_v5 = vsel %vm709_vm13, %v1635_v9, %v706_v57  ;;  %v634_v7 = vmul.f32 0.5, %v633_v59  ;;  %v492_v12 = vpop.xlane.xlu1 %491  ;;  %v496_v21 = vpop.xlane.xlu2 %495  ;;  %v666_v9 = vmul.f32 %v2360_v4, %v665_v56  ;;  %v765_v37 = vadd.f32 %v2450_v15, %v745_v13 }
 0x17c   : > { %v726_v19 = vmul.f32 %v710_v5, %v2251_v39  ;;  %v488_v44 = vpop.xlane.xlu0 %487  ;;  %v653_v39 = vmul.f32 %v2421_v60, %v652_v10  ;;  %v614_v43 = vmul.f32 0.5, %v613_v11  ;;  %v521_v28 = vmul.f32 %v492_v12, %v2236_v23 }
 0x17d   : > { %v635_v24 = vsub.f32 1.5, %v634_v7  ;;  %v519_v14 = vmul.f32 %v488_v44, %v2236_v23  ;;  %v523_v1 = vmul.f32 %v496_v21, %v2236_v23  ;;  %v670_v34 = vsel %vm2464_vm1, %v2360_v4, %v666_v9 }
 0x17e   : > { %v654_v27 = vmul.f32 0.5, %v653_v39  ;;  %v746_v32 = vmul.f32 %v2414_v53, %v726_v19  ;;  %v2479_v35 = vadd.f32 1e-05, %v521_v28  ;;  %v2482_v38 = vpop.eup %1642  ;;  %v724_v42 = vmul.f32 %v690_v26, %v2253_v40 }
 0x17f   : > { %v636_v47 = vmul.f32 %v2390_v36, %v635_v24  ;;  %vm618_vm4 = vweird.f32 %v2416_v55  ;;  %v2486_v49 = vadd.f32 1e-05, %v519_v14  ;;  %v2488_v50 = vpop.eup %1644  ;;  %v615_v51 = vsub.f32 1.5, %v614_v43 }
 0x180   : > { %v655_v46 = vsub.f32 1.5, %v654_v27  ;;  %v622_v4 = vmul.f32 %v2482_v38, %v2409_v33  ;;  %1648 = vrsqrt.f32 %v2479_v35  ;;  %v2493_v56 = vadd.f32 1e-05, %v523_v1  ;;  %v2495_v57 = vpop.eup %1646  ;;  %vm2546_vm12 = vmor %vm617_vm0, %vm618_vm4 }
 0x181   : > { %v2498_v59 = vmul.f32 %v670_v34, %v2255_v41  ;;  %vm658_vm6 = vweird.f32 %v2421_v60  ;;  %v602_v45 = vmul.f32 %v2488_v50, %v2419_v29  ;;  %v766_v61 = vadd.f32 %v2450_v15, %v746_v32 }
 0x182   : > { %v640_v41 = vsel %vm2504_vm5, %v2390_v36, %v636_v47  ;;  %v623_v63 = vmul.f32 %v2482_v38, %v622_v4  ;;  %v642_v2 = vmul.f32 %v2495_v57, %v2430_v62  ;;  %vm647_vm7 = vweird.f32 %v2430_v62  ;;  %vm2536_vm10 = vmor %vm657_vm3, %vm658_vm6 }
 0x183   : > { %v490_v5 = vpop.xlane.xlu1 %489  ;;  %v656_v7 = vmul.f32 %v2421_v60, %v655_v46  ;;  %vm627_vm8 = vweird.f32 %v2409_v33  ;;  %v603_v10 = vmul.f32 %v2488_v50, %v602_v45  ;;  %vm607_vm9 = vweird.f32 %v2419_v29  ;;  %v494_v12 = vpop.xlane.xlu2 %493 }
 0x184   : > { %1650 = vrsqrt.f32 %v2486_v49  ;;  %v744_v36 = vmul.f32 %v2414_v53, %v724_v42  ;;  %v616_v19 = vmul.f32 %v2416_v55, %v615_v51  ;;  %v624_v11 = vmul.f32 0.5, %v623_v63 }
 0x185   : > { %v643_v44 = vmul.f32 %v2495_v57, %v642_v2  ;;  %1652 = vrsqrt.f32 %v2493_v56  ;;  %v719_v21 = vmul.f32 %v640_v41, %v2269_v52  ;;  %v604_v13 = vmul.f32 0.5, %v603_v10 }
 0x186   : > { %v806_v30 = vpack.c.bf16 %v766_v61, %v765_v37  ;;  %v520_v9 = vmul.f32 %v490_v5, %v2236_v23  ;;  %v2530_v24 = vpop.eup %1648  ;;  %v625_v26 = vsub.f32 1.5, %v624_v11  ;;  %vm628_vm11 = vweird.f32 %v2482_v38 }
 0x187   : > { %v644_v43 = vmul.f32 0.5, %v643_v44  ;;  %v522_v52 = vmul.f32 %v494_v12, %v2236_v23  ;;  %v660_v18 = vsel %vm2536_vm10, %v2421_v60, %v656_v7  ;;  %v605_v28 = vsub.f32 1.5, %v604_v13  ;;  %vm2588_vm0 = vmor %vm627_vm8, %vm628_vm11 }
 0x188   : > { %v572_v14 = vmul.f32 %v2530_v24, %v2479_v35  ;;  %855 = vmatpush.bf16.msra.mxu0 %v806_v30  ;;  %1404 = vmatpush.bf16.msra.mxu1 %v806_v30  ;;  %v2555_v31 = vadd.f32 1e-05, %v520_v9  ;;  %v620_v23 = vsel %vm2546_vm12, %v2416_v55, %v616_v19  ;;  %vm608_vm13 = vweird.f32 %v2488_v50 }
 0x189   : > { %v645_v8 = vsub.f32 1.5, %v644_v43  ;;  %vm648_vm14 = vweird.f32 %v2495_v57  ;;  %1405 = vmatpush.bf16.msra.mxu2 %v806_v30  ;;  %1406 = vmatpush.bf16.msra.mxu3 %v806_v30  ;;  %v626_v1 = vmul.f32 %v2482_v38, %v625_v26  ;;  %v2567_v34 = vadd.f32 1e-05, %v522_v52  ;;  %vm2608_vm3 = vmor %vm607_vm9, %vm608_vm13 }
 0x18a   : > { %v2562_v60 = vpop.eup %1650  ;;  %v573_v32 = vmul.f32 %v2530_v24, %v572_v14  ;;  %1654 = vrsqrt.f32 %v2555_v31  ;;  %v721_v55 = vmul.f32 %v660_v18, %v2265_v48  ;;  %v764_v46 = vadd.f32 %v2450_v15, %v744_v36  ;;  %vm649_vm15 = vmor %vm647_vm7, %vm648_vm14 }
 0x18b   : > { %v2569_v47 = vpop.eup %1652  ;;  %v646_v37 = vmul.f32 %v2495_v57, %v645_v8  ;;  %v552_v42 = vmul.f32 %v2562_v60, %v2486_v49  ;;  %v717_v51 = vmul.f32 %v620_v23, %v2272_v54  ;;  %v606_v4 = vmul.f32 %v2488_v50, %v605_v28 }
 0x18c   : > { %v574_v40 = vmul.f32 0.5, %v573_v32  ;;  %v592_v48 = vmul.f32 %v2569_v47, %v2493_v56  ;;  %vm597_vm1 = vweird.f32 %v2493_v56  ;;  %v763_v62 = vadd.f32 %v2450_v15, %v2473_v16  ;;  %v780_v56 = vld [vmem:[#allocation2 + $0x70] sm:$0xff] }
 0x18d   : > { %v650_v54 = vsel %vm649_vm15, %v2495_v57, %v646_v37  ;;  %v553_v61 = vmul.f32 %v2562_v60, %v552_v42  ;;  %v630_v41 = vsel %vm2588_vm0, %v2482_v38, %v626_v1  ;;  %vm577_vm2 = vweird.f32 %v2479_v35 }
 0x18e   : > { %v720_v63 = vmul.f32 %v650_v54, %v2281_v58  ;;  %v593_v33 = vmul.f32 %v2569_v47, %v592_v48  ;;  %1656 = vrsqrt.f32 %v2567_v34  ;;  %v575_v16 = vsub.f32 1.5, %v574_v40 }
 0x18f   : > { %v554_v2 = vmul.f32 0.5, %v553_v61  ;;  %v805_v5 = vpack.c.bf16 %v764_v46, %v763_v62  ;;  %v741_v38 = vmul.f32 %v2414_v53, %v721_v55  ;;  %v610_v7 = vsel %vm2608_vm3, %v2488_v50, %v606_v4 }
 0x190   : > { %v2613_v58 = vpop.eup %1654  ;;  %v594_v10 = vmul.f32 0.5, %v593_v33  ;;  %v742_v12 = vmul.f32 %v2414_v53, %v2498_v59  ;;  %v739_v29 = vmul.f32 %v2414_v53, %v719_v21  ;;  %v718_v36 = vmul.f32 %v630_v41, %v2286_v0 }
 0x191   : > { %vm578_vm4 = vweird.f32 %v2530_v24  ;;  %v562_v19 = vmul.f32 %v2613_v58, %v2555_v31  ;;  %856 = vmatpush.bf16.msra.mxu0 %v805_v5  ;;  %1407 = vmatpush.bf16.msra.mxu1 %v805_v5  ;;  %v761_v11 = vadd.f32 %v2450_v15, %v741_v38  ;;  %vm598_vm5 = vweird.f32 %v2569_v47 }
 0x192   : > { %v595_v44 = vsub.f32 1.5, %v594_v10  ;;  %1408 = vmatpush.bf16.msra.mxu2 %v805_v5  ;;  %1409 = vmatpush.bf16.msra.mxu3 %v805_v5  ;;  %v762_v50 = vadd.f32 %v2450_v15, %v742_v12  ;;  %v740_v59 = vmul.f32 %v2414_v53, %v720_v63  ;;  %v716_v0 = vmul.f32 %v610_v7, %v2292_v3  ;;  %vm599_vm7 = vmor %vm597_vm1, %vm598_vm5  ;;  %v1396_v7 = vld [vmem:[%s2165_s12 + $0x10] sm:$0xff]  ;;  %v1398_v10 = vld [vmem:[%s2165_s12 + $0x20] sm:$0xff] }
 0x193   : > { %v576_v21 = vmul.f32 %v2530_v24, %v575_v16  ;;  %v555_v13 = vsub.f32 1.5, %v554_v2  ;;  %v563_v30 = vmul.f32 %v2613_v58, %v562_v19  ;;  %v759_v43 = vadd.f32 %v2450_v15, %v739_v29  ;;  %vm2649_vm10 = vmor %vm577_vm2, %vm578_vm4  ;;  %v1397_v12 = vld [vmem:[%s2165_s12 + $0x18] sm:$0xff]  ;;  %v1399_v29 = vld [vmem:[%s2165_s12 + $0x28] sm:$0xff] }
 0x194   : > { %v1657_v9 = vpop.eup %1656  ;;  %v596_v39 = vmul.f32 %v2569_v47, %v595_v44  ;;  %v804_v26 = vpack.c.bf16 %v762_v50, %v761_v11  ;;  %v760_v52 = vadd.f32 %v2450_v15, %v740_v59  ;;  %vm557_vm6 = vweird.f32 %v2486_v49  ;;  %v767_v19 = vld [vmem:[#allocation2 + $0x30] sm:$0xff] }
 0x195   : > { %v564_v3 = vmul.f32 0.5, %v563_v30  ;;  %vm567_vm8 = vweird.f32 %v2555_v31  ;;  %v582_v27 = vmul.f32 %v1657_v9, %v2567_v34  ;;  %vm568_vm9 = vweird.f32 %v2613_v58  ;;  %v771_v11 = vld [vmem:[#allocation2 + $0x50] sm:$0xff]  ;;  %v768_v30 = vld [vmem:[#allocation2] sm:$0xff] }
 0x196   : > { %v600_v18 = vsel %vm599_vm7, %v2569_v47, %v596_v39  ;;  %857 = vmatpush.bf16.msra.mxu0 %v804_v26  ;;  %1410 = vmatpush.bf16.msra.mxu1 %v804_v26  ;;  %v803_v28 = vpack.c.bf16 %v760_v52, %v759_v43  ;;  %v737_v14 = vmul.f32 %v2414_v53, %v717_v51  ;;  %vm558_vm11 = vweird.f32 %v2562_v60  ;;  %vm2668_vm12 = vmor %vm567_vm8, %vm568_vm9  ;;  %v781_v51 = vld [vmem:[#allocation2 + $0x78] sm:$0xff] }
 0x197   : > { %v715_v23 = vmul.f32 %v600_v18, %v2299_v6  ;;  %v565_v8 = vsub.f32 1.5, %v564_v3  ;;  %v583_v1 = vmul.f32 %v1657_v9, %v582_v27  ;;  %1411 = vmatpush.bf16.msra.mxu2 %v804_v26  ;;  %1412 = vmatpush.bf16.msra.mxu3 %v804_v26  ;;  %v738_v32 = vmul.f32 %v2414_v53, %v718_v36  ;;  %vm559_vm14 = vmor %vm557_vm6, %vm558_vm11  ;;  %v1401_v36 = vld [vmem:[%s2165_s12 + $0x38] sm:$0xff] }
 0x198   : > { %v580_v47 = vsel %vm2649_vm10, %v2530_v24, %v576_v21  ;;  %v556_v55 = vmul.f32 %v2562_v60, %v555_v13  ;;  %v736_v35 = vmul.f32 %v2414_v53, %v716_v0  ;;  %v757_v24 = vadd.f32 %v2450_v15, %v737_v14  ;;  %v775_v21 = vld [vmem:[#allocation2 + $0x40] sm:$0xff] }
 0x199   : > { %v566_v37 = vmul.f32 %v2613_v58, %v565_v8  ;;  %v584_v42 = vmul.f32 0.5, %v583_v1  ;;  %v758_v6 = vadd.f32 %v2450_v15, %v738_v32  ;;  %v735_v46 = vmul.f32 %v2414_v53, %v715_v23  ;;  %v779_v13 = vld [vmem:[#allocation2 + $0x60] sm:$0xff]  ;;  %v769_v23 = vld [vmem:[#allocation2 + $0x58] sm:$0xff]  ;;  %v773_v8 = vld [vmem:[#allocation2 + $0x8] sm:$0xff] }
 0x19a   : > { %858 = vmatpush.bf16.msra.mxu0 %v803_v28  ;;  %1413 = vmatpush.bf16.msra.mxu1 %v803_v28  ;;  %vm588_vm13 = vweird.f32 %v1657_v9  ;;  %v713_v31 = vmul.f32 %v580_v47, %v2304_v17  ;;  %v756_v54 = vadd.f32 %v2450_v15, %v736_v35  ;;  %v560_v61 = vsel %vm559_vm14, %v2562_v60, %v556_v55  ;;  %v776_v14 = vld [vmem:[#allocation2 + $0x20] sm:$0xff] }
 0x19b   : > { %v570_v4 = vsel %vm2668_vm12, %v2613_v58, %v566_v37  ;;  %v585_v40 = vsub.f32 1.5, %v584_v42  ;;  %1414 = vmatpush.bf16.msra.mxu2 %v803_v28  ;;  %1415 = vmatpush.bf16.msra.mxu3 %v803_v28  ;;  %v755_v48 = vadd.f32 %v2450_v15, %v735_v46  ;;  %v802_v45 = vpack.c.bf16 %v758_v6, %v757_v24  ;;  %v1394_v58 = vld [vmem:[%s2165_s12] sm:$0xff]  ;;  %v777_v46 = vld [vmem:[#allocation2 + $0x10] sm:$0xff]  ;;  %v770_v24 = vld [vmem:[#allocation2 + $0x18] sm:$0xff] }
 0x19c   : > { %vm587_vm15 = vweird.f32 %v2567_v34  ;;  %v712_v41 = vmul.f32 %v570_v4, %v2321_v25  ;;  %v711_v49 = vmul.f32 %v560_v61, %v2310_v20  ;;  %v733_v57 = vmul.f32 %v2414_v53, %v713_v31  ;;  %v774_v4 = vld [vmem:[#allocation2 + $0x48] sm:$0xff] }
 0x19d   : > { %v586_v62 = vmul.f32 %v1657_v9, %v585_v40  ;;  %vm589_vm0 = vmor %vm587_vm15, %vm588_vm13  ;;  %v801_v63 = vpack.c.bf16 %v756_v54, %v755_v48 }
 0x19e   : > { %859 = vmatpush.bf16.msra.mxu0 %v802_v45  ;;  %1416 = vmatpush.bf16.msra.mxu1 %v802_v45  ;;  %v732_v25 = vmul.f32 %v2414_v53, %v712_v41  ;;  %v753_v34 = vadd.f32 %v2450_v15, %v733_v57 }
 0x19f   : > { %v590_v17 = vsel %vm589_vm0, %v1657_v9, %v586_v62  ;;  %1417 = vmatpush.bf16.msra.mxu2 %v802_v45  ;;  %1418 = vmatpush.bf16.msra.mxu3 %v802_v45  ;;  %v772_v9 = vld [vmem:[#allocation2 + $0x68] sm:$0xff] }
 0x1a0   : > { %v714_v33 = vmul.f32 %v590_v17, %v2317_v22  ;;  %v731_v22 = vmul.f32 %v2414_v53, %v711_v49  ;;  %v752_v2 = vadd.f32 %v2450_v15, %v732_v25  ;;  %v782_v17 = vld [vmem:[#allocation2 + $0x28] sm:$0xff] }
 0x1a2   : > { %860 = vmatpush.bf16.msra.mxu0 %v801_v63  ;;  %1419 = vmatpush.bf16.msra.mxu1 %v801_v63  ;;  %v734_v60 = vmul.f32 %v2414_v53, %v714_v33  ;;  %v751_v5 = vadd.f32 %v2450_v15, %v731_v22  ;;  %v1400_v53 = vld [vmem:[%s2165_s12 + $0x30] sm:$0xff] }
 0x1a3   : > { %1420 = vmatpush.bf16.msra.mxu2 %v801_v63  ;;  %1421 = vmatpush.bf16.msra.mxu3 %v801_v63  ;;  %v778_v63 = vld [vmem:[#allocation2 + $0x38] sm:$0xff] }
 0x1a4   : > { %v754_v20 = vadd.f32 %v2450_v15, %v734_v60  ;;  %v799_v38 = vpack.c.bf16 %v752_v2, %v751_v5  ;;  %v1395_v15 = vld [vmem:[%s2165_s12 + $0x8] sm:$0xff] }
 0x1a6   : > { %v800_v16 = vpack.c.bf16 %v754_v20, %v753_v34 }
 0x1a8   : > { %861 = vmatpush.bf16.msra.mxu0 %v800_v16  ;;  %1422 = vmatpush.bf16.msra.mxu1 %v800_v16 }
 0x1a9   : > { %1423 = vmatpush.bf16.msra.mxu2 %v800_v16  ;;  %1424 = vmatpush.bf16.msra.mxu3 %v800_v16 }
 0x1ac   : > { %862 = vmatpush.bf16.msra.mxu0 %v799_v38  ;;  %1425 = vmatpush.bf16.msra.mxu1 %v799_v38 }
 0x1ad   : > { %1426 = vmatpush.bf16.msra.mxu2 %v799_v38  ;;  %1427 = vmatpush.bf16.msra.mxu3 %v799_v38 }
 0x1af   : > { %863 = vmatmul.bf16.vlgmr.msra.gmra.mxu0 %v1394_v58  ;;  %873 = vmatmul.bf16.vlgmr.msra.gmra.mxu1 %v1396_v7 }
 0x1b0   : > { %883 = vmatmul.bf16.vlgmr.msra.gmra.mxu2 %v1398_v10  ;;  %893 = vmatmul.bf16.vlgmr.msra.gmra.mxu3 %v1400_v53 }
 0x1bf   : > { %868 = vmatmul.bf16.gmra.mxu0 %v1395_v15  ;;  %878 = vmatmul.bf16.gmra.mxu1 %v1397_v12 }
 0x1c0   : > { %888 = vmatmul.bf16.gmra.mxu2 %v1399_v29  ;;  %898 = vmatmul.bf16.gmra.mxu3 %v1401_v36 }
 0x22c   : > { %v864_v44 = vpop.f32.mrf.mxu0  ;;  %v874_v50 = vpop.f32.mrf.mxu1 }
 0x22d   : > { %v904_v59 = vadd.f32 %v864_v44, %v767_v19  ;;  %v908_v0 = vadd.f32 %v874_v50, %v771_v11 }
 0x22f   : > { %920 = vst [vmem:[#allocation2 + $0x30] sm:$0xff] %v904_v59 }
 0x230   : > { %924 = vst [vmem:[#allocation2 + $0x50] sm:$0xff] %v908_v0 }
 0x233   : > { %v884_v39 = vpop.f32.mrf.mxu2  ;;  %v894_v26 = vpop.f32.mrf.mxu3 }
 0x234   : > { %v912_v43 = vadd.f32 %v884_v39, %v775_v21  ;;  %v916_v52 = vadd.f32 %v894_v26, %v779_v13  ;;  %v866_v3 = vpop.f32.mrf.mxu0  ;;  %v876_v27 = vpop.f32.mrf.mxu1 }
 0x235   : > { %v905_v18 = vadd.f32 %v866_v3, %v768_v30  ;;  %v909_v28 = vadd.f32 %v876_v27, %v772_v9 }
 0x236   : > { %928 = vst [vmem:[#allocation2 + $0x40] sm:$0xff] %v912_v43 }
 0x237   : > { %932 = vst [vmem:[#allocation2 + $0x60] sm:$0xff] %v916_v52 }
 0x238   : > { %921 = vst [vmem:[#allocation2] sm:$0xff] %v905_v18 }
 0x239   : > { %925 = vst [vmem:[#allocation2 + $0x68] sm:$0xff] %v909_v28 }
 0x23b   : > { %v886_v1 = vpop.f32.mrf.mxu2  ;;  %v896_v32 = vpop.f32.mrf.mxu3 }
 0x23c   : > { %v913_v47 = vadd.f32 %v886_v1, %v776_v14  ;;  %v917_v55 = vadd.f32 %v896_v32, %v780_v56  ;;  %v869_v35 = vpop.f32.mrf.mxu0  ;;  %v879_v37 = vpop.f32.mrf.mxu1 }
 0x23d   : > { %v906_v42 = vadd.f32 %v869_v35, %v769_v23  ;;  %v910_v6 = vadd.f32 %v879_v37, %v773_v8 }
 0x23e   : > { %929 = vst [vmem:[#allocation2 + $0x20] sm:$0xff] %v913_v47 }
 0x23f   : > { %933 = vst [vmem:[#allocation2 + $0x70] sm:$0xff] %v917_v55 }
 0x240   : > { %922 = vst [vmem:[#allocation2 + $0x58] sm:$0xff] %v906_v42 }
 0x241   : > { %926 = vst [vmem:[#allocation2 + $0x8] sm:$0xff] %v910_v6 }
 0x243   : > { %v889_v40 = vpop.f32.mrf.mxu2  ;;  %v899_v48 = vpop.f32.mrf.mxu3 }
 0x244   : > { %v914_v31 = vadd.f32 %v889_v40, %v777_v46  ;;  %v918_v45 = vadd.f32 %v899_v48, %v781_v51  ;;  %v871_v54 = vpop.f32.mrf.mxu0  ;;  %v881_v61 = vpop.f32.mrf.mxu1 }
 0x245   : > { %v907_v62 = vadd.f32 %v871_v54, %v770_v24  ;;  %v911_v41 = vadd.f32 %v881_v61, %v774_v4 }
 0x246   : > { %930 = vst [vmem:[#allocation2 + $0x10] sm:$0xff] %v914_v31 }
 0x247   : > { %934 = vst [vmem:[#allocation2 + $0x78] sm:$0xff] %v918_v45 }
 0x248   : > { %923 = vst [vmem:[#allocation2 + $0x18] sm:$0xff] %v907_v62 }
 0x249   : > { %927 = vst [vmem:[#allocation2 + $0x48] sm:$0xff] %v911_v41 }
 0x24b   : > { %v891_v49 = vpop.f32.mrf.mxu2  ;;  %v901_v33 = vpop.f32.mrf.mxu3  ;;  %939 = sbr.rel (%p1385_p1) target bundleno = 819 (0x333), region = 68 }
 0x24c   : > { %v915_v57 = vadd.f32 %v891_v49, %v778_v63  ;;  %v919_v60 = vadd.f32 %v901_v33, %v782_v17 }
 0x24e   : > { %931 = vst [vmem:[#allocation2 + $0x38] sm:$0xff] %v915_v57 }
 0x24f   : > { %935 = vst [vmem:[#allocation2 + $0x28] sm:$0xff] %v919_v60 }
 0x250   : > { %v986_v25 = vld [vmem:[#allocation9 + $0xf0] sm:$0xff]  ;;  %v987_v34 = vld [vmem:[#allocation9 + $0xf8] sm:$0xff]  ;;  %v984_v20 = vld [vmem:[#allocation9 + $0xe0] sm:$0xff] }
 0x251   : > { %1428 = vmatpush.msra.mxu2 %v986_v25  ;;  %1444 = vmatpush.msra.mxu3 %v987_v34  ;;  %v985_v22 = vld [vmem:[#allocation9 + $0xe8] sm:$0xff]  ;;  %v982_v16 = vld [vmem:[#allocation9 + $0xd0] sm:$0xff]  ;;  %v983_v2 = vld [vmem:[#allocation9 + $0xd8] sm:$0xff] }
 0x252   : > { %994 = vmatpush.msra.mxu0 %v986_v25  ;;  %1059 = vmatpush.msra.mxu1 %v987_v34  ;;  %v980_v5 = vld [vmem:[#allocation9 + $0xc0] sm:$0xff]  ;;  %v981_v38 = vld [vmem:[#allocation9 + $0xc8] sm:$0xff]  ;;  %v978_v58 = vld [vmem:[#allocation9 + $0xb0] sm:$0xff] }
 0x253   : > { %1429 = vmatpush.msra.mxu2 %v984_v20  ;;  %1445 = vmatpush.msra.mxu3 %v985_v22  ;;  %v979_v7 = vld [vmem:[#allocation9 + $0xb8] sm:$0xff]  ;;  %v976_v10 = vld [vmem:[#allocation9 + $0xa0] sm:$0xff]  ;;  %v977_v53 = vld [vmem:[#allocation9 + $0xa8] sm:$0xff] }
 0x254   : > { %995 = vmatpush.msra.mxu0 %v984_v20  ;;  %1060 = vmatpush.msra.mxu1 %v985_v22  ;;  %v974_v15 = vld [vmem:[#allocation9 + $0x90] sm:$0xff]  ;;  %v975_v12 = vld [vmem:[#allocation9 + $0x98] sm:$0xff]  ;;  %v972_v29 = vld [vmem:[#allocation9 + $0x80] sm:$0xff] }
 0x255   : > { %1430 = vmatpush.msra.mxu2 %v982_v16  ;;  %1446 = vmatpush.msra.mxu3 %v983_v2  ;;  %v973_v36 = vld [vmem:[#allocation9 + $0x88] sm:$0xff]  ;;  %v970_v19 = vld [vmem:[#allocation9 + $0x70] sm:$0xff]  ;;  %v971_v11 = vld [vmem:[#allocation9 + $0x78] sm:$0xff] }
 0x256   : > { %996 = vmatpush.msra.mxu0 %v982_v16  ;;  %1061 = vmatpush.msra.mxu1 %v983_v2  ;;  %v968_v44 = vld [vmem:[#allocation9 + $0x60] sm:$0xff]  ;;  %v969_v50 = vld [vmem:[#allocation9 + $0x68] sm:$0xff]  ;;  %v966_v59 = vld [vmem:[#allocation9 + $0x50] sm:$0xff] }
 0x257   : > { %1431 = vmatpush.msra.mxu2 %v980_v5  ;;  %1447 = vmatpush.msra.mxu3 %v981_v38  ;;  %v967_v0 = vld [vmem:[#allocation9 + $0x58] sm:$0xff]  ;;  %v964_v21 = vld [vmem:[#allocation9 + $0x40] sm:$0xff]  ;;  %v965_v13 = vld [vmem:[#allocation9 + $0x48] sm:$0xff] }
 0x258   : > { %997 = vmatpush.msra.mxu0 %v980_v5  ;;  %1062 = vmatpush.msra.mxu1 %v981_v38  ;;  %v962_v30 = vld [vmem:[#allocation9 + $0x30] sm:$0xff]  ;;  %v963_v9 = vld [vmem:[#allocation9 + $0x38] sm:$0xff]  ;;  %v960_v39 = vld [vmem:[#allocation9 + $0x20] sm:$0xff] }
 0x259   : > { %1432 = vmatpush.msra.mxu2 %v978_v58  ;;  %1448 = vmatpush.msra.mxu3 %v979_v7  ;;  %v961_v26 = vld [vmem:[#allocation9 + $0x28] sm:$0xff]  ;;  %v958_v43 = vld [vmem:[#allocation9 + $0x10] sm:$0xff]  ;;  %v959_v52 = vld [vmem:[#allocation9 + $0x18] sm:$0xff] }
 0x25a   : > { %998 = vmatpush.msra.mxu0 %v978_v58  ;;  %1063 = vmatpush.msra.mxu1 %v979_v7  ;;  %v956_v3 = vld [vmem:[#allocation9] sm:$0xff]  ;;  %v957_v27 = vld [vmem:[#allocation9 + $0x8] sm:$0xff]  ;;  %v942_v8 = vld [vmem:[#allocation2 + $0x58] sm:$0xff] }
 0x25b   : > { %1433 = vmatpush.msra.mxu2 %v976_v10  ;;  %1449 = vmatpush.msra.mxu3 %v977_v53  ;;  %v948_v18 = vld [vmem:[#allocation2 + $0x40] sm:$0xff]  ;;  %v940_v28 = vld [vmem:[#allocation2 + $0x30] sm:$0xff]  ;;  %v951_v1 = vld [vmem:[#allocation2 + $0x38] sm:$0xff] }
 0x25c   : > { %999 = vmatpush.msra.mxu0 %v976_v10  ;;  %1064 = vmatpush.msra.mxu1 %v977_v53  ;;  %v949_v14 = vld [vmem:[#allocation2 + $0x20] sm:$0xff]  ;;  %v950_v23 = vld [vmem:[#allocation2 + $0x10] sm:$0xff]  ;;  %v943_v32 = vld [vmem:[#allocation2 + $0x18] sm:$0xff] }
 0x25d   : > { %1434 = vmatpush.msra.mxu2 %v974_v15  ;;  %1450 = vmatpush.msra.mxu3 %v975_v12  ;;  %v941_v56 = vld [vmem:[#allocation2] sm:$0xff]  ;;  %v944_v55 = vld [vmem:[#allocation2 + $0x50] sm:$0xff]  ;;  %v945_v37 = vld [vmem:[#allocation2 + $0x68] sm:$0xff] }
 0x25e   : > { %1000 = vmatpush.msra.mxu0 %v974_v15  ;;  %1065 = vmatpush.msra.mxu1 %v975_v12  ;;  %v952_v47 = vld [vmem:[#allocation2 + $0x60] sm:$0xff]  ;;  %v953_v35 = vld [vmem:[#allocation2 + $0x70] sm:$0xff]  ;;  %v954_v42 = vld [vmem:[#allocation2 + $0x78] sm:$0xff] }
 0x25f   : > { %1435 = vmatpush.msra.mxu2 %v972_v29  ;;  %1451 = vmatpush.msra.mxu3 %v973_v36  ;;  %v946_v6 = vld [vmem:[#allocation2 + $0x8] sm:$0xff]  ;;  %v988_v24 = vld [vmem:[%s2896_s18] sm:$0x3] }
 0x260   : > { %1001 = vmatpush.msra.mxu0 %v972_v29  ;;  %1066 = vmatpush.msra.mxu1 %v973_v36  ;;  %v955_v46 = vld [vmem:[#allocation2 + $0x28] sm:$0xff]  ;;  %v2708_v4 = vperm.slane %v988_v24, 0  ;;  %v2710_v40 = vperm.slane %v988_v24, 1 }
 0x261   : > { %1436 = vmatpush.msra.mxu2 %v970_v19  ;;  %1452 = vmatpush.msra.mxu3 %v971_v11  ;;  %v947_v51 = vld [vmem:[#allocation2 + $0x48] sm:$0xff] }
 0x262   : > { %1002 = vmatpush.msra.mxu0 %v970_v19  ;;  %1067 = vmatpush.msra.mxu1 %v971_v11 }
 0x263   : > { %1437 = vmatpush.msra.mxu2 %v968_v44  ;;  %1453 = vmatpush.msra.mxu3 %v969_v50 }
 0x264   : > { %1003 = vmatpush.msra.mxu0 %v968_v44  ;;  %1068 = vmatpush.msra.mxu1 %v969_v50 }
 0x265   : > { %1438 = vmatpush.msra.mxu2 %v966_v59  ;;  %1454 = vmatpush.msra.mxu3 %v967_v0 }
 0x266   : > { %1004 = vmatpush.msra.mxu0 %v966_v59  ;;  %1069 = vmatpush.msra.mxu1 %v967_v0 }
 0x267   : > { %1439 = vmatpush.msra.mxu2 %v964_v21  ;;  %1455 = vmatpush.msra.mxu3 %v965_v13 }
 0x268   : > { %1005 = vmatpush.msra.mxu0 %v964_v21  ;;  %1070 = vmatpush.msra.mxu1 %v965_v13 }
 0x269   : > { %1440 = vmatpush.msra.mxu2 %v962_v30  ;;  %1456 = vmatpush.msra.mxu3 %v963_v9 }
 0x26a   : > { %1006 = vmatpush.msra.mxu0 %v962_v30  ;;  %1071 = vmatpush.msra.mxu1 %v963_v9 }
 0x26b   : > { %1441 = vmatpush.msra.mxu2 %v960_v39  ;;  %1457 = vmatpush.msra.mxu3 %v961_v26 }
 0x26c   : > { %1007 = vmatpush.msra.mxu0 %v960_v39  ;;  %1072 = vmatpush.msra.mxu1 %v961_v26 }
 0x26d   : > { %1442 = vmatpush.msra.mxu2 %v958_v43  ;;  %1458 = vmatpush.msra.mxu3 %v959_v52 }
 0x26e   : > { %1008 = vmatpush.msra.mxu0 %v958_v43  ;;  %1073 = vmatpush.msra.mxu1 %v959_v52 }
 0x26f   : > { %1443 = vmatpush.msra.mxu2 %v956_v3  ;;  %1459 = vmatpush.msra.mxu3 %v957_v27 }
 0x270   : > { %1034 = vmatmul.f32.vlgmr.msra.gmra.mxu2 %v948_v18  ;;  %1099 = vmatmul.f32.vlgmr.msra.gmra.mxu3 %v948_v18 }
 0x271   : > { %1009 = vmatpush.msra.mxu0 %v956_v3  ;;  %1074 = vmatpush.msra.mxu1 %v957_v27 }
 0x272   : > { %1010 = vmatmul.f32.vlgmr.msra.gmra.mxu0 %v940_v28  ;;  %1075 = vmatmul.f32.vlgmr.msra.gmra.mxu1 %v940_v28 }
 0x278   : > { %1037 = vmatmul.f32.gmra.mxu2 %v949_v14  ;;  %1102 = vmatmul.f32.gmra.mxu3 %v949_v14 }
 0x27a   : > { %1013 = vmatmul.f32.gmra.mxu0 %v941_v56  ;;  %1078 = vmatmul.f32.gmra.mxu1 %v941_v56 }
 0x280   : > { %1040 = vmatmul.f32.gmra.mxu2 %v950_v23  ;;  %1105 = vmatmul.f32.gmra.mxu3 %v950_v23 }
 0x282   : > { %1016 = vmatmul.f32.gmra.mxu0 %v942_v8  ;;  %1081 = vmatmul.f32.gmra.mxu1 %v942_v8 }
 0x288   : > { %1043 = vmatmul.f32.gmra.mxu2 %v951_v1  ;;  %1108 = vmatmul.f32.gmra.mxu3 %v951_v1 }
 0x28a   : > { %1019 = vmatmul.f32.gmra.mxu0 %v943_v32  ;;  %1084 = vmatmul.f32.gmra.mxu1 %v943_v32 }
 0x290   : > { %1046 = vmatmul.f32.gmra.mxu2 %v952_v47  ;;  %1111 = vmatmul.f32.gmra.mxu3 %v952_v47 }
 0x292   : > { %1022 = vmatmul.f32.gmra.mxu0 %v944_v55  ;;  %1087 = vmatmul.f32.gmra.mxu1 %v944_v55 }
 0x298   : > { %1049 = vmatmul.f32.gmra.mxu2 %v953_v35  ;;  %1114 = vmatmul.f32.gmra.mxu3 %v953_v35 }
 0x29a   : > { %1025 = vmatmul.f32.gmra.mxu0 %v945_v37  ;;  %1090 = vmatmul.f32.gmra.mxu1 %v945_v37 }
 0x2a0   : > { %1052 = vmatmul.f32.gmra.mxu2 %v954_v42  ;;  %1117 = vmatmul.f32.gmra.mxu3 %v954_v42 }
 0x2a2   : > { %1028 = vmatmul.f32.gmra.mxu0 %v946_v6  ;;  %1093 = vmatmul.f32.gmra.mxu1 %v946_v6 }
 0x2a8   : > { %1055 = vmatmul.f32.gmra.mxu2 %v955_v46  ;;  %1120 = vmatmul.f32.gmra.mxu3 %v955_v46 }
 0x2aa   : > { %1031 = vmatmul.f32.gmra.mxu0 %v947_v51  ;;  %1096 = vmatmul.f32.gmra.mxu1 %v947_v51 }
 0x2ef   : > { %v1011_v48 = vpop.f32.mrf.mxu0  ;;  %v1076_v31 = vpop.f32.mrf.mxu1 }
 0x2f0   : > { %v1012_v45 = vadd.f32 %v1011_v48, %v2708_v4  ;;  %v1077_v54 = vadd.f32 %v1076_v31, %v2710_v40 }
 0x2f2   : > { %v1124_v61 = vmax.f32 %v1012_v45, 0.0  ;;  %v1125_v62 = vmax.f32 %v1077_v54, 0.0 }
 0x2f3   : > { %v1035_v41 = vpop.f32.mrf.mxu2  ;;  %v1100_v63 = vpop.f32.mrf.mxu3 }
 0x2f4   : > { %v1036_v17 = vadd.f32 %v1035_v41, %v2708_v4  ;;  %v1156_v49 = vpack.c.bf16 %v1125_v62, %v1124_v61  ;;  %v1101_v33 = vadd.f32 %v1100_v63, %v2710_v40 }
 0x2f6   : > { %v1140_v57 = vmax.f32 %v1036_v17, 0.0  ;;  %1172 = vst [vmem:[%s2190_s7] sm:$0xff] %v1156_v49  ;;  %v1141_v60 = vmax.f32 %v1101_v33, 0.0 }
 0x2f7   : > { %v1014_v25 = vpop.f32.mrf.mxu0  ;;  %v1079_v34 = vpop.f32.mrf.mxu1 }
 0x2f8   : > { %v1164_v20 = vpack.c.bf16 %v1141_v60, %v1140_v57  ;;  %v1015_v22 = vadd.f32 %v1014_v25, %v2708_v4  ;;  %v1080_v16 = vadd.f32 %v1079_v34, %v2710_v40 }
 0x2fa   : > { %1180 = vst [vmem:[%s2190_s7 + $0x40] sm:$0xff] %v1164_v20  ;;  %v1126_v2 = vmax.f32 %v1015_v22, 0.0  ;;  %v1127_v5 = vmax.f32 %v1080_v16, 0.0 }
 0x2fb   : > { %v1038_v38 = vpop.f32.mrf.mxu2  ;;  %v1103_v58 = vpop.f32.mrf.mxu3 }
 0x2fc   : > { %v1039_v7 = vadd.f32 %v1038_v38, %v2708_v4  ;;  %v1157_v10 = vpack.c.bf16 %v1127_v5, %v1126_v2  ;;  %v1104_v53 = vadd.f32 %v1103_v58, %v2710_v40 }
 0x2fe   : > { %v1142_v15 = vmax.f32 %v1039_v7, 0.0  ;;  %1173 = vst [vmem:[%s2190_s7 + $0x8] sm:$0xff] %v1157_v10  ;;  %v1143_v12 = vmax.f32 %v1104_v53, 0.0 }
 0x2ff   : > { %v1017_v29 = vpop.f32.mrf.mxu0  ;;  %v1082_v36 = vpop.f32.mrf.mxu1 }
 0x300   : > { %v1165_v19 = vpack.c.bf16 %v1143_v12, %v1142_v15  ;;  %v1018_v11 = vadd.f32 %v1017_v29, %v2708_v4  ;;  %v1083_v44 = vadd.f32 %v1082_v36, %v2710_v40 }
 0x302   : > { %1181 = vst [vmem:[%s2190_s7 + $0x48] sm:$0xff] %v1165_v19  ;;  %v1128_v50 = vmax.f32 %v1018_v11, 0.0  ;;  %v1129_v59 = vmax.f32 %v1083_v44, 0.0 }
 0x303   : > { %v1041_v0 = vpop.f32.mrf.mxu2  ;;  %v1106_v21 = vpop.f32.mrf.mxu3 }
 0x304   : > { %v1042_v13 = vadd.f32 %v1041_v0, %v2708_v4  ;;  %v1158_v30 = vpack.c.bf16 %v1129_v59, %v1128_v50  ;;  %v1107_v9 = vadd.f32 %v1106_v21, %v2710_v40 }
 0x306   : > { %v1144_v39 = vmax.f32 %v1042_v13, 0.0  ;;  %1174 = vst [vmem:[%s2190_s7 + $0x10] sm:$0xff] %v1158_v30  ;;  %v1145_v26 = vmax.f32 %v1107_v9, 0.0 }
 0x307   : > { %v1020_v43 = vpop.f32.mrf.mxu0  ;;  %v1085_v52 = vpop.f32.mrf.mxu1 }
 0x308   : > { %v1166_v3 = vpack.c.bf16 %v1145_v26, %v1144_v39  ;;  %v1021_v27 = vadd.f32 %v1020_v43, %v2708_v4  ;;  %v1086_v18 = vadd.f32 %v1085_v52, %v2710_v40 }
 0x30a   : > { %1182 = vst [vmem:[%s2190_s7 + $0x50] sm:$0xff] %v1166_v3  ;;  %v1130_v28 = vmax.f32 %v1021_v27, 0.0  ;;  %v1131_v14 = vmax.f32 %v1086_v18, 0.0 }
 0x30b   : > { %v1044_v56 = vpop.f32.mrf.mxu2  ;;  %v1109_v23 = vpop.f32.mrf.mxu3 }
 0x30c   : > { %v1045_v8 = vadd.f32 %v1044_v56, %v2708_v4  ;;  %v1159_v1 = vpack.c.bf16 %v1131_v14, %v1130_v28  ;;  %v1110_v32 = vadd.f32 %v1109_v23, %v2710_v40 }
 0x30e   : > { %v1146_v47 = vmax.f32 %v1045_v8, 0.0  ;;  %1175 = vst [vmem:[%s2190_s7 + $0x18] sm:$0xff] %v1159_v1  ;;  %v1147_v55 = vmax.f32 %v1110_v32, 0.0 }
 0x30f   : > { %v1023_v35 = vpop.f32.mrf.mxu0  ;;  %v1088_v37 = vpop.f32.mrf.mxu1 }
 0x310   : > { %v1167_v42 = vpack.c.bf16 %v1147_v55, %v1146_v47  ;;  %v1024_v6 = vadd.f32 %v1023_v35, %v2708_v4  ;;  %v1089_v46 = vadd.f32 %v1088_v37, %v2710_v40 }
 0x312   : > { %1183 = vst [vmem:[%s2190_s7 + $0x58] sm:$0xff] %v1167_v42  ;;  %v1132_v51 = vmax.f32 %v1024_v6, 0.0  ;;  %v1133_v24 = vmax.f32 %v1089_v46, 0.0 }
 0x313   : > { %v1047_v48 = vpop.f32.mrf.mxu2  ;;  %v1112_v31 = vpop.f32.mrf.mxu3 }
 0x314   : > { %v1048_v45 = vadd.f32 %v1047_v48, %v2708_v4  ;;  %v1160_v54 = vpack.c.bf16 %v1133_v24, %v1132_v51  ;;  %v1113_v61 = vadd.f32 %v1112_v31, %v2710_v40 }
 0x316   : > { %v1148_v62 = vmax.f32 %v1048_v45, 0.0  ;;  %1176 = vst [vmem:[%s2190_s7 + $0x20] sm:$0xff] %v1160_v54  ;;  %v1149_v41 = vmax.f32 %v1113_v61, 0.0 }
 0x317   : > { %v1026_v63 = vpop.f32.mrf.mxu0  ;;  %v1091_v17 = vpop.f32.mrf.mxu1 }
 0x318   : > { %v1168_v49 = vpack.c.bf16 %v1149_v41, %v1148_v62  ;;  %v1027_v33 = vadd.f32 %v1026_v63, %v2708_v4  ;;  %v1092_v57 = vadd.f32 %v1091_v17, %v2710_v40 }
 0x31a   : > { %1184 = vst [vmem:[%s2190_s7 + $0x60] sm:$0xff] %v1168_v49  ;;  %v1134_v60 = vmax.f32 %v1027_v33, 0.0  ;;  %v1135_v25 = vmax.f32 %v1092_v57, 0.0 }
 0x31b   : > { %v1050_v34 = vpop.f32.mrf.mxu2  ;;  %v1115_v20 = vpop.f32.mrf.mxu3 }
 0x31c   : > { %v1051_v22 = vadd.f32 %v1050_v34, %v2708_v4  ;;  %v1161_v16 = vpack.c.bf16 %v1135_v25, %v1134_v60  ;;  %v1116_v2 = vadd.f32 %v1115_v20, %v2710_v40 }
 0x31e   : > { %v1150_v5 = vmax.f32 %v1051_v22, 0.0  ;;  %1177 = vst [vmem:[%s2190_s7 + $0x28] sm:$0xff] %v1161_v16  ;;  %v1151_v38 = vmax.f32 %v1116_v2, 0.0 }
 0x31f   : > { %v1029_v58 = vpop.f32.mrf.mxu0  ;;  %v1094_v7 = vpop.f32.mrf.mxu1 }
 0x320   : > { %v1169_v10 = vpack.c.bf16 %v1151_v38, %v1150_v5  ;;  %v1030_v53 = vadd.f32 %v1029_v58, %v2708_v4  ;;  %v1095_v15 = vadd.f32 %v1094_v7, %v2710_v40 }
 0x322   : > { %1185 = vst [vmem:[%s2190_s7 + $0x68] sm:$0xff] %v1169_v10  ;;  %v1136_v12 = vmax.f32 %v1030_v53, 0.0  ;;  %v1137_v29 = vmax.f32 %v1095_v15, 0.0 }
 0x323   : > { %v1053_v36 = vpop.f32.mrf.mxu2  ;;  %v1118_v19 = vpop.f32.mrf.mxu3 }
 0x324   : > { %v1054_v11 = vadd.f32 %v1053_v36, %v2708_v4  ;;  %v1162_v44 = vpack.c.bf16 %v1137_v29, %v1136_v12  ;;  %v1119_v50 = vadd.f32 %v1118_v19, %v2710_v40 }
 0x326   : > { %v1152_v59 = vmax.f32 %v1054_v11, 0.0  ;;  %1178 = vst [vmem:[%s2190_s7 + $0x30] sm:$0xff] %v1162_v44  ;;  %v1153_v0 = vmax.f32 %v1119_v50, 0.0 }
 0x327   : > { %v1032_v21 = vpop.f32.mrf.mxu0  ;;  %v1097_v13 = vpop.f32.mrf.mxu1 }
 0x328   : > { %v1170_v30 = vpack.c.bf16 %v1153_v0, %v1152_v59  ;;  %v1033_v9 = vadd.f32 %v1032_v21, %v2708_v4  ;;  %v1098_v39 = vadd.f32 %v1097_v13, %v2710_v40 }
 0x32a   : > { %1186 = vst [vmem:[%s2190_s7 + $0x70] sm:$0xff] %v1170_v30  ;;  %v1138_v26 = vmax.f32 %v1033_v9, 0.0  ;;  %v1139_v43 = vmax.f32 %v1098_v39, 0.0 }
 0x32b   : > { %v1056_v52 = vpop.f32.mrf.mxu2  ;;  %v1121_v3 = vpop.f32.mrf.mxu3 }
 0x32c   : > { %v1057_v27 = vadd.f32 %v1056_v52, %v2708_v4  ;;  %v1163_v18 = vpack.c.bf16 %v1139_v43, %v1138_v26  ;;  %v1122_v28 = vadd.f32 %v1121_v3, %v2710_v40 }
 0x32e   : > { %v1154_v14 = vmax.f32 %v1057_v27, 0.0  ;;  %1179 = vst [vmem:[%s2190_s7 + $0x38] sm:$0xff] %v1163_v18  ;;  %v1155_v56 = vmax.f32 %v1122_v28, 0.0 }
 0x330   : > { %v1171_v23 = vpack.c.bf16 %v1155_v56, %v1154_v14 }
 0x332   : > { %1187 = vst [vmem:[%s2190_s7 + $0x78] sm:$0xff] %v1171_v23 }
 0x333 PF: > { %s2897_s19 = sld [smem:[#allocation20_spill]]  ;;  %s1202_s27 = sshll.u32 %s2190_s7, 4  ;;  %s1203_s27 = int_to_ptr.vmem [resolvable:$true] %s1202_s27 }
 0x334   : > { %s2899_s20 = sld [smem:[#allocation33_spill]]  ;;  %s1189_s6 = scalar_lea.sflag [#allocation5], %s358_s14 }
 0x339   : > { %s1403_s21 = sshll.u32 %s2897_s19, 7 }
 0x33a   : > { %s1201_s17 = scalar_lea.hbm %s2899_s20, %s1403_s21  ;;  %s1798_s5 = scalar_lea.hbm %s2899_s20, 256 }
 0x33b   : > { %s1204_s12 = sshll.u32 %s1201_s17, 4  ;;  %s1205_s12 = int_to_ptr.hbm [resolvable:$true] %s1204_s12 }
 0x33c   : > { %s1792_s0 = sshra.s32 %s1205_s12, 4  ;;  %s1793_s0 = int_to_ptr.hbm [resolvable:$true] %s1792_s0 }
 0x33d   : > { %s1794_s23 = scalar_lea.hbm %s1793_s0, 128  ;;  %p1799_p12 = scmp.lt.s32.totalorder %s1793_s0, %s2899_s20 }
 0x33e   : > { %p1795_p5 = scmp.ne.s32.totalorder %s1793_s0, %s1794_s23  ;;  %p1800_p0 = scmp.lt.s32.totalorder %s1798_s5, %s1794_s23 }
 0x340   : > { %p1796_p13 = pnand %p1795_p5, %p2076_p9  ;;  %p1801_p4 = por %p1800_p0, %p1799_p12 }
 0x342   : > { %p1797_p7 = pneg %p1796_p13 }
 0x344   : > { %p1802_p6 = pnand %p1801_p4, %p1797_p7 }
 0x346   : > { %1805 = shalt.err (!%p1802_p6)
}
 0x347   : > { %s1948_s14 = smov 128   ;;  %s1949_s7 = smov 8  }
 0x348   : > { %1472 = dma.vmem_to_hbm [thread:$0]  (%p2076_p9), %s1203_s27, 2048, %s1205_s12, %s1189_s6, %s1948_s14, %s1948_s14, %s1949_s7  }
 0x349 PF: > { %s2900_s13 = sld [smem:[#allocation17_spill]]  ;;  %p1497_p10 = scmp.ge.s32.totalorder %s1936_s10, 2 }
 0x34b   : > { %p1489_p2 = pnand %p1497_p10, %p2081_p11 }
 0x34d   : > { %p1490_p8 = pneg %p1489_p2 }
 0x34f   : > { %s1219_s3 = sand.u32 1, %s2900_s13  }
 0x350   : > { %s1220_s18 = scalar_lea.sflag [#allocation5], %s1219_s3 }
 0x351   : > { %1879 = dma.done.wait (%p1490_p8), %s1220_s18, 2048  }
 0x352   : > { %1881 = vsyncadd (%p1490_p8), %s1220_s18, 4294965248  ;;  %s26_s10 = sadd.s32 1, %s1936_s10   ;;  %s2903_s4 = sld [smem:[#allocation18_spill]] }
 0x353   : > { %p2782_p3 = scmp.ge.s32.totalorder %s26_s10, 6   ;;  %s2904_s23 = sld [smem:[#allocation26_spill]] }
 0x354   : > { %s2905_s2 = sld [smem:[#allocation19_spill]]  ;;  %s2910_s21 = smov %s1888_s22 }
 0x355   : > { %s2906_s16 = sld [smem:[#allocation27_spill]]  ;;  %s2912_s24 = smov %s1900_s25 }
 0x356   : > { %s2907_s7 = sld [smem:[#allocation21_spill]]  ;;  %s2913_s25 = smov %s1904_s26 }
 0x357   : > { %s2908_s17 = sld [smem:[#allocation24_spill]]  ;;  %s2914_s26 = smov %s2151_s29 }
 0x358   : > { %s2909_s9 = sld [smem:[#allocation25_spill]]  ;;  %s2911_s22 = smov %s2903_s4 }
 0x359   : > { %s2915_s27 = smov %s1912_s28  ;;  %s2918_s30 = smov %s1928_s8 }
 0x35a   : > { %s2916_s28 = smov %s2905_s2  ;;  %25 = sbr.rel (!%p2782_p3) target bundleno = 20 (0x14), region = 118 }
 0x35b   : > { %s2917_s29 = smov %s2906_s16 }
 0x35d   : > { %s2919_s8 = smov %s2908_s17 }
 0x35f   :  { %1226 = vsyncpa [#allocation4], 1 }
 0x360   :  { %1228 = vsyncpa [#allocation4 + $0x1], 1 }
 0x361   :  { %1229 = vsyncpa [#allocation7], 1 }
 0x362   :  { %1231 = vsyncpa [#allocation7 + $0x1], 1 }
 0x363   :  { %1232 = vsyncpa [#allocation10], 1 }
 0x364   :  { %1233 = vsyncpa [#allocation5], 1 }
 0x365   :  { %1235 = vsyncpa [#allocation5 + $0x1], 1 }

</bundles_post_ra>
